<compile_context>
chip_gen: v6e
topology: v6e:2x2x1
jax: 0.10.0
libtpu: 0.0.40
codegen_flags: <defaults>
</compile_context>

<pallas_src>
import functools

import jax
import jax.numpy as jnp
import numpy as np
from jax.experimental import pallas as pl
from jax.experimental.pallas import tpu as pltpu


_VMEM = pl.BlockSpec(memory_space=pltpu.MemorySpace.VMEM)
_N_OUTPUTS = 2


# ---------------------------------------------------------------------------
# Shared math: used both by the Pallas kernel (weight refs + lazy loader) and
# by the pure-JAX reference (plain arrays + identity loader) so the
# correctness check is exact.
#
# Inputs:
#   h_pk : packed recurrent state (N, layer_num * h_dim), h_pk[:, i*H:(i+1)*H] == h[i]
#   w    : flat list of weight refs / arrays (order must match init_params)
#   ld   : loader applied at each weight's point of use (lazy for the kernel)
# Returns:
#   ms_slab (N, 5*z_dim) = [prior_mean | prior_std | enc_mean | enc_std | z]
#   h_out   list of (N, h_dim) per layer
# ---------------------------------------------------------------------------
def _generative_math(layer_num, h_dim, z_dim, x, h_pk, diff, adj, eps, w, ld):
    it = iter(w)
    nxt = lambda: next(it)
    dot = functools.partial(jnp.dot, preferred_element_type=jnp.float32)
    relu = lambda v: jnp.maximum(v, 0.0)
    cat = lambda parts: jnp.concatenate(parts, axis=1)
    H, Z = h_dim, z_dim

    # ---- unpack refs (no loads yet; ld() at point of use) ----
    w_px, b_px = nxt(), nxt()                       # phi_x
    w_pz, b_pz = nxt(), nxt()                       # phi_z
    w_enc, b_enc = nxt(), nxt()                     # enc fused (4H, H)
    w_ms, b_ms = nxt(), nxt()                       # enc_mean|std fused (2H, 2Z)
    wp_h, wp_diff, b_p = nxt(), nxt(), nxt()        # prior (h part, diff col, bias)
    w_pms, b_pms = nxt(), nxt()                     # prior_mean|std (H, 2Z)
    layers = []
    for _ in range(layer_num):
        layers.append(dict(w_gx=nxt(), b_gx=nxt(),  # x-gates xz|xr|xh fused
                           w_gh=nxt(), b_gh=nxt(),  # h-gates hz|hr fused
                           w_hh=nxt(), b_hh=nxt())) # candidate gate fused

    h_i = lambda i: h_pk[:, i * H:(i + 1) * H]
    h_last = h_i(layer_num - 1)

    # ---- stage 0: x embedding + ONE batched adjacency aggregation ----
    phiX = relu(dot(x, ld(w_px)) + ld(b_px))
    agg0 = dot(adj, cat([phiX, h_pk]))              # (N, (L+1)*H), single fat adj matmul
    agg_phiX = agg0[:, :H]
    agg_h = lambda i: agg0[:, (i + 1) * H:(i + 2) * H]
    agg_h_last = agg_h(layer_num - 1)

    # ---- hoisted h-only work (independent of the enc -> z chain) ----
    gh_list = []
    for i in range(layer_num):
        lp = layers[i]
        gh = dot(cat([agg_h(i), h_i(i)]), ld(lp["w_gh"])) + ld(lp["b_gh"])
        gh_list.append(gh)

    # prior = Linear([h[-1], diff]); width-1 diff column -> broadcast multiply
    prior_x = relu(dot(h_last, ld(wp_h)) + diff * ld(wp_diff) + ld(b_p))
    prior_ms = dot(prior_x, ld(w_pms)) + ld(b_pms)
    prior_mean = prior_ms[:, :Z]
    prior_std = jax.nn.softplus(prior_ms[:, Z:])

    # ---- encoder chain (serial dependency path) ----
    enc_x = relu(dot(cat([agg_phiX, agg_h_last, phiX, h_last]), ld(w_enc)) + ld(b_enc))
    agg_enc = dot(adj, enc_x)
    enc_ms = dot(cat([agg_enc, enc_x]), ld(w_ms)) + ld(b_ms)
    enc_mean = enc_ms[:, :Z]
    enc_std = jax.nn.softplus(enc_ms[:, Z:])

    # reparameterization (fused) + phi_z
    z = eps * enc_std + enc_mean
    phiZ = relu(dot(z, ld(w_pz)) + ld(b_pz))
    agg_phiZ = dot(adj, phiZ)

    # ---- Graph-GRU (dropout p = 0 -> no-op) ----
    h_out = []
    cur = None
    for i in range(layer_num):
        lp = layers[i]
        hi = h_i(i)
        gh = gh_list[i]
        hz, hr = gh[:, :H], gh[:, H:]

        if i == 0:
            gx = dot(cat([agg_phiX, agg_phiZ, phiX, phiZ]), ld(lp["w_gx"])) + ld(lp["b_gx"])
        else:
            gx = dot(cat([dot(adj, cur), cur]), ld(lp["w_gx"])) + ld(lp["b_gx"])
        xz, xr, xh = gx[:, :H], gx[:, H:2 * H], gx[:, 2 * H:]

        zg = jax.nn.sigmoid(xz + hz)
        rg = jax.nn.sigmoid(xr + hr)
        rh = rg * hi
        hh = dot(cat([dot(adj, rh), rh]), ld(lp["w_hh"])) + ld(lp["b_hh"])
        h_tilde = jnp.tanh(xh + hh)
        out = zg * hi + (1.0 - zg) * h_tilde
        h_out.append(out)
        cur = out

    ms_slab = jnp.concatenate([prior_mean, prior_std, enc_mean, enc_std, z], axis=1)
    return ms_slab, h_out


# ---------------------------------------------------------------------------
# Fused Pallas kernel
# ---------------------------------------------------------------------------
def _fused_generative_kernel(layer_num, h_dim, z_dim, *refs):
    in_refs = refs[:-_N_OUTPUTS]
    ms_ref, hout_ref = refs[-_N_OUTPUTS:]

    x_ref, h_ref, diff_ref, adj_ref, eps_ref = in_refs[:5]
    w_refs = list(in_refs[5:])

    # NOTE: h_ref is fully loaded *before* any store to hout_ref (which may
    # alias it via input_output_aliases).
    ms, h_out = _generative_math(
        layer_num, h_dim, z_dim,
        x_ref[...], h_ref[...], diff_ref[...], adj_ref[...], eps_ref[...],
        w_refs, lambda r: r[...])          # lazy weight loads at point of use

    ms_ref[...] = ms
    hout_ref[...] = jnp.concatenate(h_out, axis=1)


@jax.jit
def generative_forward(params, x, h, diff, adj, eps):
    """Single fused pallas_call for the whole Generative.forward."""
    n = x.shape[0]
    layer_num, _, h_dim = h.shape
    z_dim = eps.shape[1]

    # pack recurrent state lane-dense: (L, N, H) -> (N, L*H)
    h_pk = jnp.reshape(jnp.transpose(h, (1, 0, 2)), (n, layer_num * h_dim))

    flat_inputs = [x, h_pk, diff, adj, eps] + list(params)
    out_shape = (
        jax.ShapeDtypeStruct((n, 5 * z_dim), jnp.float32),            # packed stats slab
        jax.ShapeDtypeStruct((n, layer_num * h_dim), jnp.float32),    # packed h_out
    )
    kernel = functools.partial(_fused_generative_kernel, layer_num, h_dim, z_dim)
    ms, h_out_pk = pl.pallas_call(
        kernel,
        out_shape=out_shape,
        in_specs=[_VMEM] * len(flat_inputs),
        out_specs=(_VMEM,) * _N_OUTPUTS,
        input_output_aliases={1: 1},       # recurrent h updated in place
    )(*flat_inputs)

    # unpack lane-dense slabs (free layout plumbing in the wrapper)
    pm = ms[:, 0 * z_dim:1 * z_dim]
    ps = ms[:, 1 * z_dim:2 * z_dim]
    em = ms[:, 2 * z_dim:3 * z_dim]
    es = ms[:, 3 * z_dim:4 * z_dim]
    z = ms[:, 4 * z_dim:5 * z_dim]
    h_out = jnp.transpose(jnp.reshape(h_out_pk, (n, layer_num, h_dim)), (1, 0, 2))
    return (pm, ps), (em, es), z, h_out


# ---------------------------------------------------------------------------
# Pure-JAX reference (same math, same param packing) for a correctness check
# ---------------------------------------------------------------------------
def generative_reference(params, x, h, diff, adj, eps):
    layer_num, n, h_dim = h.shape
    z_dim = eps.shape[1]
    h_pk = jnp.reshape(jnp.transpose(h, (1, 0, 2)), (n, layer_num * h_dim))
    ms, h_out = _generative_math(layer_num, h_dim, z_dim, x, h_pk, diff, adj, eps,
                                 list(params), lambda a: a)
    pm = ms[:, 0 * z_dim:1 * z_dim]
    ps = ms[:, 1 * z_dim:2 * z_dim]
    em = ms[:, 2 * z_dim:3 * z_dim]
    es = ms[:, 3 * z_dim:4 * z_dim]
    z = ms[:, 4 * z_dim:5 * z_dim]
    return (pm, ps), (em, es), z, jnp.stack(h_out, axis=0)


# ---------------------------------------------------------------------------
# Deterministic parameter init (flat list, fused/pre-stacked weights, in the
# kernel's unpack order).  Each fused weight is the vertical stacking of the
# original module's separate (wl; wr) / concat-input matrices, so this spans
# the same function family as the PyTorch module.
# ---------------------------------------------------------------------------
def init_params(key, x_dim, h_dim, z_dim, layer_num):
    keys = iter(jax.random.split(key, 256))
    nk = lambda: next(keys)
    w = lambda shape: 0.1 * jax.random.normal(nk(), shape, jnp.float32)

    p = []
    p += [w((x_dim, h_dim)), w((1, h_dim))]                   # phi_x
    p += [w((z_dim, h_dim)), w((1, h_dim))]                   # phi_z
    p += [w((4 * h_dim, h_dim)), w((1, h_dim))]               # enc: [aggX|aggH|X|H] fused
    p += [w((2 * h_dim, 2 * z_dim)), w((1, 2 * z_dim))]       # enc_mean|std: [agg|raw] fused
    p += [w((h_dim, h_dim)), w((1, h_dim)), w((1, h_dim))]    # prior (h, diff col, bias)
    p += [w((h_dim, 2 * z_dim)), w((1, 2 * z_dim))]           # prior_mean|std fused
    for i in range(layer_num):
        if i == 0:   # x-gates xz|xr|xh over [agg_phiX|agg_phiZ|phiX|phiZ]
            p += [w((4 * h_dim, 3 * h_dim)), w((1, 3 * h_dim))]
        else:        # x-gates over [agg_cur|cur]
            p += [w((2 * h_dim, 3 * h_dim)), w((1, 3 * h_dim))]
        p += [w((2 * h_dim, 2 * h_dim)), w((1, 2 * h_dim))]   # h-gates hz|hr fused
        p += [w((2 * h_dim, h_dim)), w((1, h_dim))]           # hh gate fused
    return p


def build_mean_adj(edge_index, num_nodes):
    """Dense row-normalized adjacency for SAGEConv mean aggregation."""
    src, dst = np.asarray(edge_index)
    a = np.zeros((num_nodes, num_nodes), np.float32)
    for s, d in zip(src, dst):
        a[d, s] += 1.0
    deg = a.sum(axis=1, keepdims=True)
    deg = np.where(deg > 0.0, deg, 1.0)
    return jnp.asarray(a / deg)


# ---------------------------------------------------------------------------
if __name__ == "__main__":
    N, X_DIM, H_DIM, Z_DIM, LAYER_NUM = 8, 6, 32, 16, 2

    key = jax.random.PRNGKey(0)
    k_param, k_x, k_h, k_diff, k_eps = jax.random.split(key, 5)

    params = init_params(k_param, X_DIM, H_DIM, Z_DIM, LAYER_NUM)

    x = jax.random.normal(k_x, (N, X_DIM), jnp.float32)
    h = jax.random.normal(k_h, (LAYER_NUM, N, H_DIM), jnp.float32)
    diff = jax.random.normal(k_diff, (N, 1), jnp.float32)
    eps = jax.random.normal(k_eps, (N, Z_DIM), jnp.float32)
    edge_index = np.array(
        [[0, 1, 2, 3, 4, 5, 6, 7, 0, 2],
         [1, 2, 3, 4, 5, 6, 7, 0, 4, 6]], dtype=np.int32)
    adj = build_mean_adj(edge_index, N)

    (pm, ps), (em, es), z, h_out = generative_forward(params, x, h, diff, adj, eps)
    jax.block_until_ready((pm, ps, em, es, z, h_out))

    # shape checks
    assert pm.shape == (N, Z_DIM) and ps.shape == (N, Z_DIM)
    assert em.shape == (N, Z_DIM) and es.shape == (N, Z_DIM)
    assert z.shape == (N, Z_DIM)
    assert h_out.shape == (LAYER_NUM, N, H_DIM)

    # correctness check against a pure-JAX reference of the same math
    # (tightened tolerance per review: all-f32 path)
    (rpm, rps), (rem, res), rz, rh = generative_reference(params, x, h, diff, adj, eps)
    for got, want in [(pm, rpm), (ps, rps), (em, rem), (es, res), (z, rz), (h_out, rh)]:
        np.testing.assert_allclose(np.asarray(got), np.asarray(want),
                                   rtol=1e-4, atol=1e-4)

    print("KERNEL_OK")
</pallas_src>

<mosaic_0001>
module attributes {stable_mosaic.version = 11 : i64} {
  func.func @_fused_generative_kernel(%arg0: memref<8x6xf32, #tpu.memory_space<vmem>>, %arg1: memref<8x64xf32, #tpu.memory_space<vmem>>, %arg2: memref<8x1xf32, #tpu.memory_space<vmem>>, %arg3: memref<8x8xf32, #tpu.memory_space<vmem>>, %arg4: memref<8x16xf32, #tpu.memory_space<vmem>>, %arg5: memref<6x32xf32, #tpu.memory_space<vmem>>, %arg6: memref<1x32xf32, #tpu.memory_space<vmem>>, %arg7: memref<16x32xf32, #tpu.memory_space<vmem>>, %arg8: memref<1x32xf32, #tpu.memory_space<vmem>>, %arg9: memref<128x32xf32, #tpu.memory_space<vmem>>, %arg10: memref<1x32xf32, #tpu.memory_space<vmem>>, %arg11: memref<64x32xf32, #tpu.memory_space<vmem>>, %arg12: memref<1x32xf32, #tpu.memory_space<vmem>>, %arg13: memref<32x32xf32, #tpu.memory_space<vmem>>, %arg14: memref<1x32xf32, #tpu.memory_space<vmem>>, %arg15: memref<1x32xf32, #tpu.memory_space<vmem>>, %arg16: memref<32x32xf32, #tpu.memory_space<vmem>>, %arg17: memref<1x32xf32, #tpu.memory_space<vmem>>, %arg18: memref<128x96xf32, #tpu.memory_space<vmem>>, %arg19: memref<1x96xf32, #tpu.memory_space<vmem>>, %arg20: memref<64x64xf32, #tpu.memory_space<vmem>>, %arg21: memref<1x64xf32, #tpu.memory_space<vmem>>, %arg22: memref<64x32xf32, #tpu.memory_space<vmem>>, %arg23: memref<1x32xf32, #tpu.memory_space<vmem>>, %arg24: memref<64x96xf32, #tpu.memory_space<vmem>>, %arg25: memref<1x96xf32, #tpu.memory_space<vmem>>, %arg26: memref<64x64xf32, #tpu.memory_space<vmem>>, %arg27: memref<1x64xf32, #tpu.memory_space<vmem>>, %arg28: memref<64x32xf32, #tpu.memory_space<vmem>>, %arg29: memref<1x32xf32, #tpu.memory_space<vmem>>, %arg30: memref<8x80xf32, #tpu.memory_space<vmem>>, %arg31: memref<8x64xf32, #tpu.memory_space<vmem>>) attributes {dimension_semantics = [], scalar_prefetch = 0 : i64, scratch_operands = 0 : i64, tpu.core_type = #tpu.core_type<tc>} {
    %c0 = arith.constant 0 : index
    %c0_0 = arith.constant 0 : index
    %0 = vector.load %arg0[%c0, %c0_0] : memref<8x6xf32, #tpu.memory_space<vmem>>, vector<8x6xf32>
    %c0_1 = arith.constant 0 : index
    %c0_2 = arith.constant 0 : index
    %1 = vector.load %arg1[%c0_1, %c0_2] : memref<8x64xf32, #tpu.memory_space<vmem>>, vector<8x64xf32>
    %c0_3 = arith.constant 0 : index
    %c0_4 = arith.constant 0 : index
    %2 = vector.load %arg2[%c0_3, %c0_4] : memref<8x1xf32, #tpu.memory_space<vmem>>, vector<8x1xf32>
    %c0_5 = arith.constant 0 : index
    %c0_6 = arith.constant 0 : index
    %3 = vector.load %arg3[%c0_5, %c0_6] : memref<8x8xf32, #tpu.memory_space<vmem>>, vector<8x8xf32>
    %c0_7 = arith.constant 0 : index
    %c0_8 = arith.constant 0 : index
    %4 = vector.load %arg4[%c0_7, %c0_8] : memref<8x16xf32, #tpu.memory_space<vmem>>, vector<8x16xf32>
    %5 = vector.extract_strided_slice %1 {offsets = [0, 32], sizes = [8, 32], strides = [1, 1]} : vector<8x64xf32> to vector<8x32xf32>
    %c0_9 = arith.constant 0 : index
    %c0_10 = arith.constant 0 : index
    %6 = vector.load %arg5[%c0_9, %c0_10] : memref<6x32xf32, #tpu.memory_space<vmem>>, vector<6x32xf32>
    %cst = arith.constant dense<0.000000e+00> : vector<8x32xf32>
    %7 = tpu.matmul %0, %6, %cst {dimension_numbers = #tpu.dot_dimension_numbers<[1], [0], [0], [1], [0, 0, 1, 1], [], []>} : vector<8x6xf32>, vector<6x32xf32>, vector<8x32xf32> -> vector<8x32xf32>
    %c0_11 = arith.constant 0 : index
    %c0_12 = arith.constant 0 : index
    %8 = vector.load %arg6[%c0_11, %c0_12] : memref<1x32xf32, #tpu.memory_space<vmem>>, vector<1x32xf32>
    %9 = vector.broadcast %8 : vector<1x32xf32> to vector<8x32xf32>
    %10 = arith.addf %7, %9 : vector<8x32xf32>
    %cst_13 = arith.constant 0.000000e+00 : f32
    %11 = vector.broadcast %cst_13 : f32 to vector<8x32xf32>
    %12 = arith.maximumf %10, %11 : vector<8x32xf32>
    %13 = tpu.concatenate %12, %1 in 1 : vector<8x32xf32>, vector<8x64xf32> -> vector<8x96xf32>
    %cst_14 = arith.constant dense<0.000000e+00> : vector<8x96xf32>
    %14 = tpu.matmul %3, %13, %cst_14 {dimension_numbers = #tpu.dot_dimension_numbers<[1], [0], [0], [1], [0, 0, 1, 1], [], []>} : vector<8x8xf32>, vector<8x96xf32>, vector<8x96xf32> -> vector<8x96xf32>
    %15 = vector.extract_strided_slice %14 {offsets = [0, 0], sizes = [8, 32], strides = [1, 1]} : vector<8x96xf32> to vector<8x32xf32>
    %16 = vector.extract_strided_slice %14 {offsets = [0, 64], sizes = [8, 32], strides = [1, 1]} : vector<8x96xf32> to vector<8x32xf32>
    %17 = vector.extract_strided_slice %14 {offsets = [0, 32], sizes = [8, 32], strides = [1, 1]} : vector<8x96xf32> to vector<8x32xf32>
    %18 = vector.extract_strided_slice %1 {offsets = [0, 0], sizes = [8, 32], strides = [1, 1]} : vector<8x64xf32> to vector<8x32xf32>
    %19 = tpu.concatenate %17, %18 in 1 : vector<8x32xf32>, vector<8x32xf32> -> vector<8x64xf32>
    %c0_15 = arith.constant 0 : index
    %c0_16 = arith.constant 0 : index
    %20 = vector.load %arg20[%c0_15, %c0_16] : memref<64x64xf32, #tpu.memory_space<vmem>>, vector<64x64xf32>
    %cst_17 = arith.constant dense<0.000000e+00> : vector<8x64xf32>
    %21 = tpu.matmul %19, %20, %cst_17 {dimension_numbers = #tpu.dot_dimension_numbers<[1], [0], [0], [1], [0, 0, 1, 1], [], []>} : vector<8x64xf32>, vector<64x64xf32>, vector<8x64xf32> -> vector<8x64xf32>
    %c0_18 = arith.constant 0 : index
    %c0_19 = arith.constant 0 : index
    %22 = vector.load %arg21[%c0_18, %c0_19] : memref<1x64xf32, #tpu.memory_space<vmem>>, vector<1x64xf32>
    %23 = vector.broadcast %22 : vector<1x64xf32> to vector<8x64xf32>
    %24 = arith.addf %21, %23 : vector<8x64xf32>
    %25 = vector.extract_strided_slice %14 {offsets = [0, 64], sizes = [8, 32], strides = [1, 1]} : vector<8x96xf32> to vector<8x32xf32>
    %26 = vector.extract_strided_slice %1 {offsets = [0, 32], sizes = [8, 32], strides = [1, 1]} : vector<8x64xf32> to vector<8x32xf32>
    %27 = tpu.concatenate %25, %26 in 1 : vector<8x32xf32>, vector<8x32xf32> -> vector<8x64xf32>
    %c0_20 = arith.constant 0 : index
    %c0_21 = arith.constant 0 : index
    %28 = vector.load %arg26[%c0_20, %c0_21] : memref<64x64xf32, #tpu.memory_space<vmem>>, vector<64x64xf32>
    %cst_22 = arith.constant dense<0.000000e+00> : vector<8x64xf32>
    %29 = tpu.matmul %27, %28, %cst_22 {dimension_numbers = #tpu.dot_dimension_numbers<[1], [0], [0], [1], [0, 0, 1, 1], [], []>} : vector<8x64xf32>, vector<64x64xf32>, vector<8x64xf32> -> vector<8x64xf32>
    %c0_23 = arith.constant 0 : index
    %c0_24 = arith.constant 0 : index
    %30 = vector.load %arg27[%c0_23, %c0_24] : memref<1x64xf32, #tpu.memory_space<vmem>>, vector<1x64xf32>
    %31 = vector.broadcast %30 : vector<1x64xf32> to vector<8x64xf32>
    %32 = arith.addf %29, %31 : vector<8x64xf32>
    %c0_25 = arith.constant 0 : index
    %c0_26 = arith.constant 0 : index
    %33 = vector.load %arg13[%c0_25, %c0_26] : memref<32x32xf32, #tpu.memory_space<vmem>>, vector<32x32xf32>
    %cst_27 = arith.constant dense<0.000000e+00> : vector<8x32xf32>
    %34 = tpu.matmul %5, %33, %cst_27 {dimension_numbers = #tpu.dot_dimension_numbers<[1], [0], [0], [1], [0, 0, 1, 1], [], []>} : vector<8x32xf32>, vector<32x32xf32>, vector<8x32xf32> -> vector<8x32xf32>
    %c0_28 = arith.constant 0 : index
    %c0_29 = arith.constant 0 : index
    %35 = vector.load %arg14[%c0_28, %c0_29] : memref<1x32xf32, #tpu.memory_space<vmem>>, vector<1x32xf32>
    %36 = vector.broadcast %2 : vector<8x1xf32> to vector<8x32xf32>
    %37 = vector.broadcast %35 : vector<1x32xf32> to vector<8x32xf32>
    %38 = arith.mulf %36, %37 : vector<8x32xf32>
    %39 = arith.addf %34, %38 : vector<8x32xf32>
    %c0_30 = arith.constant 0 : index
    %c0_31 = arith.constant 0 : index
    %40 = vector.load %arg15[%c0_30, %c0_31] : memref<1x32xf32, #tpu.memory_space<vmem>>, vector<1x32xf32>
    %41 = vector.broadcast %40 : vector<1x32xf32> to vector<8x32xf32>
    %42 = arith.addf %39, %41 : vector<8x32xf32>
    %cst_32 = arith.constant 0.000000e+00 : f32
    %43 = vector.broadcast %cst_32 : f32 to vector<8x32xf32>
    %44 = arith.maximumf %42, %43 : vector<8x32xf32>
    %c0_33 = arith.constant 0 : index
    %c0_34 = arith.constant 0 : index
    %45 = vector.load %arg16[%c0_33, %c0_34] : memref<32x32xf32, #tpu.memory_space<vmem>>, vector<32x32xf32>
    %cst_35 = arith.constant dense<0.000000e+00> : vector<8x32xf32>
    %46 = tpu.matmul %44, %45, %cst_35 {dimension_numbers = #tpu.dot_dimension_numbers<[1], [0], [0], [1], [0, 0, 1, 1], [], []>} : vector<8x32xf32>, vector<32x32xf32>, vector<8x32xf32> -> vector<8x32xf32>
    %c0_36 = arith.constant 0 : index
    %c0_37 = arith.constant 0 : index
    %47 = vector.load %arg17[%c0_36, %c0_37] : memref<1x32xf32, #tpu.memory_space<vmem>>, vector<1x32xf32>
    %48 = vector.broadcast %47 : vector<1x32xf32> to vector<8x32xf32>
    %49 = arith.addf %46, %48 : vector<8x32xf32>
    %50 = vector.extract_strided_slice %49 {offsets = [0, 0], sizes = [8, 16], strides = [1, 1]} : vector<8x32xf32> to vector<8x16xf32>
    %51 = vector.extract_strided_slice %49 {offsets = [0, 16], sizes = [8, 16], strides = [1, 1]} : vector<8x32xf32> to vector<8x16xf32>
    %cst_38 = arith.constant 0.000000e+00 : f32
    %52 = vector.broadcast %cst_38 : f32 to vector<8x16xf32>
    %53 = arith.maximumf %51, %52 : vector<8x16xf32>
    %54 = vector.broadcast %cst_38 : f32 to vector<8x16xf32>
    %55 = arith.subf %51, %54 : vector<8x16xf32>
    %56 = arith.cmpf one, %55, %55 : vector<8x16xf32>
    %57 = vector.broadcast %cst_38 : f32 to vector<8x16xf32>
    %58 = arith.addf %51, %57 : vector<8x16xf32>
    %59 = math.absf %55 : vector<8x16xf32>
    %cst_39 = arith.constant 0.000000e+00 : f32
    %60 = vector.broadcast %cst_39 : f32 to vector<8x16xf32>
    %61 = arith.subf %60, %59 : vector<8x16xf32>
    %62 = math.exp %61 : vector<8x16xf32>
    %63 = math.log1p %62 : vector<8x16xf32>
    %64 = arith.addf %53, %63 : vector<8x16xf32>
    %65 = arith.select %56, %58, %64 : vector<8x16xi1>, vector<8x16xf32>
    %66 = tpu.concatenate %15, %16, %12, %5 in 1 : vector<8x32xf32>, vector<8x32xf32>, vector<8x32xf32>, vector<8x32xf32> -> vector<8x128xf32>
    %c0_40 = arith.constant 0 : index
    %c0_41 = arith.constant 0 : index
    %67 = vector.load %arg9[%c0_40, %c0_41] : memref<128x32xf32, #tpu.memory_space<vmem>>, vector<128x32xf32>
    %cst_42 = arith.constant dense<0.000000e+00> : vector<8x32xf32>
    %68 = tpu.matmul %66, %67, %cst_42 {dimension_numbers = #tpu.dot_dimension_numbers<[1], [0], [0], [1], [0, 0, 1, 1], [], []>} : vector<8x128xf32>, vector<128x32xf32>, vector<8x32xf32> -> vector<8x32xf32>
    %c0_43 = arith.constant 0 : index
    %c0_44 = arith.constant 0 : index
    %69 = vector.load %arg10[%c0_43, %c0_44] : memref<1x32xf32, #tpu.memory_space<vmem>>, vector<1x32xf32>
    %70 = vector.broadcast %69 : vector<1x32xf32> to vector<8x32xf32>
    %71 = arith.addf %68, %70 : vector<8x32xf32>
    %cst_45 = arith.constant 0.000000e+00 : f32
    %72 = vector.broadcast %cst_45 : f32 to vector<8x32xf32>
    %73 = arith.maximumf %71, %72 : vector<8x32xf32>
    %cst_46 = arith.constant dense<0.000000e+00> : vector<8x32xf32>
    %74 = tpu.matmul %3, %73, %cst_46 {dimension_numbers = #tpu.dot_dimension_numbers<[1], [0], [0], [1], [0, 0, 1, 1], [], []>} : vector<8x8xf32>, vector<8x32xf32>, vector<8x32xf32> -> vector<8x32xf32>
    %75 = tpu.concatenate %74, %73 in 1 : vector<8x32xf32>, vector<8x32xf32> -> vector<8x64xf32>
    %c0_47 = arith.constant 0 : index
    %c0_48 = arith.constant 0 : index
    %76 = vector.load %arg11[%c0_47, %c0_48] : memref<64x32xf32, #tpu.memory_space<vmem>>, vector<64x32xf32>
    %cst_49 = arith.constant dense<0.000000e+00> : vector<8x32xf32>
    %77 = tpu.matmul %75, %76, %cst_49 {dimension_numbers = #tpu.dot_dimension_numbers<[1], [0], [0], [1], [0, 0, 1, 1], [], []>} : vector<8x64xf32>, vector<64x32xf32>, vector<8x32xf32> -> vector<8x32xf32>
    %c0_50 = arith.constant 0 : index
    %c0_51 = arith.constant 0 : index
    %78 = vector.load %arg12[%c0_50, %c0_51] : memref<1x32xf32, #tpu.memory_space<vmem>>, vector<1x32xf32>
    %79 = vector.broadcast %78 : vector<1x32xf32> to vector<8x32xf32>
    %80 = arith.addf %77, %79 : vector<8x32xf32>
    %81 = vector.extract_strided_slice %80 {offsets = [0, 0], sizes = [8, 16], strides = [1, 1]} : vector<8x32xf32> to vector<8x16xf32>
    %82 = vector.extract_strided_slice %80 {offsets = [0, 16], sizes = [8, 16], strides = [1, 1]} : vector<8x32xf32> to vector<8x16xf32>
    %cst_52 = arith.constant 0.000000e+00 : f32
    %83 = vector.broadcast %cst_52 : f32 to vector<8x16xf32>
    %84 = arith.maximumf %82, %83 : vector<8x16xf32>
    %85 = vector.broadcast %cst_52 : f32 to vector<8x16xf32>
    %86 = arith.subf %82, %85 : vector<8x16xf32>
    %87 = arith.cmpf one, %86, %86 : vector<8x16xf32>
    %88 = vector.broadcast %cst_52 : f32 to vector<8x16xf32>
    %89 = arith.addf %82, %88 : vector<8x16xf32>
    %90 = math.absf %86 : vector<8x16xf32>
    %cst_53 = arith.constant 0.000000e+00 : f32
    %91 = vector.broadcast %cst_53 : f32 to vector<8x16xf32>
    %92 = arith.subf %91, %90 : vector<8x16xf32>
    %93 = math.exp %92 : vector<8x16xf32>
    %94 = math.log1p %93 : vector<8x16xf32>
    %95 = arith.addf %84, %94 : vector<8x16xf32>
    %96 = arith.select %87, %89, %95 : vector<8x16xi1>, vector<8x16xf32>
    %97 = arith.mulf %4, %96 : vector<8x16xf32>
    %98 = arith.addf %97, %81 : vector<8x16xf32>
    %c0_54 = arith.constant 0 : index
    %c0_55 = arith.constant 0 : index
    %99 = vector.load %arg7[%c0_54, %c0_55] : memref<16x32xf32, #tpu.memory_space<vmem>>, vector<16x32xf32>
    %cst_56 = arith.constant dense<0.000000e+00> : vector<8x32xf32>
    %100 = tpu.matmul %98, %99, %cst_56 {dimension_numbers = #tpu.dot_dimension_numbers<[1], [0], [0], [1], [0, 0, 1, 1], [], []>} : vector<8x16xf32>, vector<16x32xf32>, vector<8x32xf32> -> vector<8x32xf32>
    %c0_57 = arith.constant 0 : index
    %c0_58 = arith.constant 0 : index
    %101 = vector.load %arg8[%c0_57, %c0_58] : memref<1x32xf32, #tpu.memory_space<vmem>>, vector<1x32xf32>
    %102 = vector.broadcast %101 : vector<1x32xf32> to vector<8x32xf32>
    %103 = arith.addf %100, %102 : vector<8x32xf32>
    %cst_59 = arith.constant 0.000000e+00 : f32
    %104 = vector.broadcast %cst_59 : f32 to vector<8x32xf32>
    %105 = arith.maximumf %103, %104 : vector<8x32xf32>
    %cst_60 = arith.constant dense<0.000000e+00> : vector<8x32xf32>
    %106 = tpu.matmul %3, %105, %cst_60 {dimension_numbers = #tpu.dot_dimension_numbers<[1], [0], [0], [1], [0, 0, 1, 1], [], []>} : vector<8x8xf32>, vector<8x32xf32>, vector<8x32xf32> -> vector<8x32xf32>
    %107 = vector.extract_strided_slice %1 {offsets = [0, 0], sizes = [8, 32], strides = [1, 1]} : vector<8x64xf32> to vector<8x32xf32>
    %108 = vector.extract_strided_slice %24 {offsets = [0, 0], sizes = [8, 32], strides = [1, 1]} : vector<8x64xf32> to vector<8x32xf32>
    %109 = vector.extract_strided_slice %24 {offsets = [0, 32], sizes = [8, 32], strides = [1, 1]} : vector<8x64xf32> to vector<8x32xf32>
    %110 = tpu.concatenate %15, %106, %12, %105 in 1 : vector<8x32xf32>, vector<8x32xf32>, vector<8x32xf32>, vector<8x32xf32> -> vector<8x128xf32>
    %c0_61 = arith.constant 0 : index
    %c0_62 = arith.constant 0 : index
    %111 = vector.load %arg18[%c0_61, %c0_62] : memref<128x96xf32, #tpu.memory_space<vmem>>, vector<128x96xf32>
    %cst_63 = arith.constant dense<0.000000e+00> : vector<8x96xf32>
    %112 = tpu.matmul %110, %111, %cst_63 {dimension_numbers = #tpu.dot_dimension_numbers<[1], [0], [0], [1], [0, 0, 1, 1], [], []>} : vector<8x128xf32>, vector<128x96xf32>, vector<8x96xf32> -> vector<8x96xf32>
    %c0_64 = arith.constant 0 : index
    %c0_65 = arith.constant 0 : index
    %113 = vector.load %arg19[%c0_64, %c0_65] : memref<1x96xf32, #tpu.memory_space<vmem>>, vector<1x96xf32>
    %114 = vector.broadcast %113 : vector<1x96xf32> to vector<8x96xf32>
    %115 = arith.addf %112, %114 : vector<8x96xf32>
    %116 = vector.extract_strided_slice %115 {offsets = [0, 0], sizes = [8, 32], strides = [1, 1]} : vector<8x96xf32> to vector<8x32xf32>
    %117 = vector.extract_strided_slice %115 {offsets = [0, 32], sizes = [8, 32], strides = [1, 1]} : vector<8x96xf32> to vector<8x32xf32>
    %118 = vector.extract_strided_slice %115 {offsets = [0, 64], sizes = [8, 32], strides = [1, 1]} : vector<8x96xf32> to vector<8x32xf32>
    %119 = arith.addf %116, %108 : vector<8x32xf32>
    %120 = arith.negf %119 : vector<8x32xf32>
    %121 = math.exp %120 : vector<8x32xf32>
    %cst_66 = arith.constant 1.000000e+00 : f32
    %122 = vector.broadcast %cst_66 : f32 to vector<8x32xf32>
    %123 = arith.addf %122, %121 : vector<8x32xf32>
    %124 = arith.divf %122, %123 : vector<8x32xf32>
    %125 = arith.addf %117, %109 : vector<8x32xf32>
    %126 = arith.negf %125 : vector<8x32xf32>
    %127 = math.exp %126 : vector<8x32xf32>
    %cst_67 = arith.constant 1.000000e+00 : f32
    %128 = vector.broadcast %cst_67 : f32 to vector<8x32xf32>
    %129 = arith.addf %128, %127 : vector<8x32xf32>
    %130 = arith.divf %128, %129 : vector<8x32xf32>
    %131 = arith.mulf %130, %107 : vector<8x32xf32>
    %cst_68 = arith.constant dense<0.000000e+00> : vector<8x32xf32>
    %132 = tpu.matmul %3, %131, %cst_68 {dimension_numbers = #tpu.dot_dimension_numbers<[1], [0], [0], [1], [0, 0, 1, 1], [], []>} : vector<8x8xf32>, vector<8x32xf32>, vector<8x32xf32> -> vector<8x32xf32>
    %133 = tpu.concatenate %132, %131 in 1 : vector<8x32xf32>, vector<8x32xf32> -> vector<8x64xf32>
    %c0_69 = arith.constant 0 : index
    %c0_70 = arith.constant 0 : index
    %134 = vector.load %arg22[%c0_69, %c0_70] : memref<64x32xf32, #tpu.memory_space<vmem>>, vector<64x32xf32>
    %cst_71 = arith.constant dense<0.000000e+00> : vector<8x32xf32>
    %135 = tpu.matmul %133, %134, %cst_71 {dimension_numbers = #tpu.dot_dimension_numbers<[1], [0], [0], [1], [0, 0, 1, 1], [], []>} : vector<8x64xf32>, vector<64x32xf32>, vector<8x32xf32> -> vector<8x32xf32>
    %c0_72 = arith.constant 0 : index
    %c0_73 = arith.constant 0 : index
    %136 = vector.load %arg23[%c0_72, %c0_73] : memref<1x32xf32, #tpu.memory_space<vmem>>, vector<1x32xf32>
    %137 = vector.broadcast %136 : vector<1x32xf32> to vector<8x32xf32>
    %138 = arith.addf %135, %137 : vector<8x32xf32>
    %139 = arith.addf %118, %138 : vector<8x32xf32>
    %140 = math.tanh %139 : vector<8x32xf32>
    %141 = arith.mulf %124, %107 : vector<8x32xf32>
    %cst_74 = arith.constant 1.000000e+00 : f32
    %142 = vector.broadcast %cst_74 : f32 to vector<8x32xf32>
    %143 = arith.subf %142, %124 : vector<8x32xf32>
    %144 = arith.mulf %143, %140 : vector<8x32xf32>
    %145 = arith.addf %141, %144 : vector<8x32xf32>
    %146 = vector.extract_strided_slice %1 {offsets = [0, 32], sizes = [8, 32], strides = [1, 1]} : vector<8x64xf32> to vector<8x32xf32>
    %147 = vector.extract_strided_slice %32 {offsets = [0, 0], sizes = [8, 32], strides = [1, 1]} : vector<8x64xf32> to vector<8x32xf32>
    %148 = vector.extract_strided_slice %32 {offsets = [0, 32], sizes = [8, 32], strides = [1, 1]} : vector<8x64xf32> to vector<8x32xf32>
    %cst_75 = arith.constant dense<0.000000e+00> : vector<8x32xf32>
    %149 = tpu.matmul %3, %145, %cst_75 {dimension_numbers = #tpu.dot_dimension_numbers<[1], [0], [0], [1], [0, 0, 1, 1], [], []>} : vector<8x8xf32>, vector<8x32xf32>, vector<8x32xf32> -> vector<8x32xf32>
    %150 = tpu.concatenate %149, %145 in 1 : vector<8x32xf32>, vector<8x32xf32> -> vector<8x64xf32>
    %c0_76 = arith.constant 0 : index
    %c0_77 = arith.constant 0 : index
    %151 = vector.load %arg24[%c0_76, %c0_77] : memref<64x96xf32, #tpu.memory_space<vmem>>, vector<64x96xf32>
    %cst_78 = arith.constant dense<0.000000e+00> : vector<8x96xf32>
    %152 = tpu.matmul %150, %151, %cst_78 {dimension_numbers = #tpu.dot_dimension_numbers<[1], [0], [0], [1], [0, 0, 1, 1], [], []>} : vector<8x64xf32>, vector<64x96xf32>, vector<8x96xf32> -> vector<8x96xf32>
    %c0_79 = arith.constant 0 : index
    %c0_80 = arith.constant 0 : index
    %153 = vector.load %arg25[%c0_79, %c0_80] : memref<1x96xf32, #tpu.memory_space<vmem>>, vector<1x96xf32>
    %154 = vector.broadcast %153 : vector<1x96xf32> to vector<8x96xf32>
    %155 = arith.addf %152, %154 : vector<8x96xf32>
    %156 = vector.extract_strided_slice %155 {offsets = [0, 0], sizes = [8, 32], strides = [1, 1]} : vector<8x96xf32> to vector<8x32xf32>
    %157 = vector.extract_strided_slice %155 {offsets = [0, 32], sizes = [8, 32], strides = [1, 1]} : vector<8x96xf32> to vector<8x32xf32>
    %158 = vector.extract_strided_slice %155 {offsets = [0, 64], sizes = [8, 32], strides = [1, 1]} : vector<8x96xf32> to vector<8x32xf32>
    %159 = arith.addf %156, %147 : vector<8x32xf32>
    %160 = arith.negf %159 : vector<8x32xf32>
    %161 = math.exp %160 : vector<8x32xf32>
    %cst_81 = arith.constant 1.000000e+00 : f32
    %162 = vector.broadcast %cst_81 : f32 to vector<8x32xf32>
    %163 = arith.addf %162, %161 : vector<8x32xf32>
    %164 = arith.divf %162, %163 : vector<8x32xf32>
    %165 = arith.addf %157, %148 : vector<8x32xf32>
    %166 = arith.negf %165 : vector<8x32xf32>
    %167 = math.exp %166 : vector<8x32xf32>
    %cst_82 = arith.constant 1.000000e+00 : f32
    %168 = vector.broadcast %cst_82 : f32 to vector<8x32xf32>
    %169 = arith.addf %168, %167 : vector<8x32xf32>
    %170 = arith.divf %168, %169 : vector<8x32xf32>
    %171 = arith.mulf %170, %146 : vector<8x32xf32>
    %cst_83 = arith.constant dense<0.000000e+00> : vector<8x32xf32>
    %172 = tpu.matmul %3, %171, %cst_83 {dimension_numbers = #tpu.dot_dimension_numbers<[1], [0], [0], [1], [0, 0, 1, 1], [], []>} : vector<8x8xf32>, vector<8x32xf32>, vector<8x32xf32> -> vector<8x32xf32>
    %173 = tpu.concatenate %172, %171 in 1 : vector<8x32xf32>, vector<8x32xf32> -> vector<8x64xf32>
    %c0_84 = arith.constant 0 : index
    %c0_85 = arith.constant 0 : index
    %174 = vector.load %arg28[%c0_84, %c0_85] : memref<64x32xf32, #tpu.memory_space<vmem>>, vector<64x32xf32>
    %cst_86 = arith.constant dense<0.000000e+00> : vector<8x32xf32>
    %175 = tpu.matmul %173, %174, %cst_86 {dimension_numbers = #tpu.dot_dimension_numbers<[1], [0], [0], [1], [0, 0, 1, 1], [], []>} : vector<8x64xf32>, vector<64x32xf32>, vector<8x32xf32> -> vector<8x32xf32>
    %c0_87 = arith.constant 0 : index
    %c0_88 = arith.constant 0 : index
    %176 = vector.load %arg29[%c0_87, %c0_88] : memref<1x32xf32, #tpu.memory_space<vmem>>, vector<1x32xf32>
    %177 = vector.broadcast %176 : vector<1x32xf32> to vector<8x32xf32>
    %178 = arith.addf %175, %177 : vector<8x32xf32>
    %179 = arith.addf %158, %178 : vector<8x32xf32>
    %180 = math.tanh %179 : vector<8x32xf32>
    %181 = arith.mulf %164, %146 : vector<8x32xf32>
    %cst_89 = arith.constant 1.000000e+00 : f32
    %182 = vector.broadcast %cst_89 : f32 to vector<8x32xf32>
    %183 = arith.subf %182, %164 : vector<8x32xf32>
    %184 = arith.mulf %183, %180 : vector<8x32xf32>
    %185 = arith.addf %181, %184 : vector<8x32xf32>
    %186 = tpu.concatenate %50, %65, %81, %96, %98 in 1 : vector<8x16xf32>, vector<8x16xf32>, vector<8x16xf32>, vector<8x16xf32>, vector<8x16xf32> -> vector<8x80xf32>
    %c0_90 = arith.constant 0 : index
    %c0_91 = arith.constant 0 : index
    %187 = vector.load %arg30[%c0_90, %c0_91] : memref<8x80xf32, #tpu.memory_space<vmem>>, vector<8x80xf32>
    tpu.vector_store %arg30[%c0_90, %c0_91], %186 {strides = array<i32>} : memref<8x80xf32, #tpu.memory_space<vmem>>, vector<8x80xf32>,
    %188 = tpu.concatenate %145, %185 in 1 : vector<8x32xf32>, vector<8x32xf32> -> vector<8x64xf32>
    %c0_92 = arith.constant 0 : index
    %c0_93 = arith.constant 0 : index
    %189 = vector.load %arg31[%c0_92, %c0_93] : memref<8x64xf32, #tpu.memory_space<vmem>>, vector<8x64xf32>
    tpu.vector_store %arg31[%c0_92, %c0_93], %188 {strides = array<i32>} : memref<8x64xf32, #tpu.memory_space<vmem>>, vector<8x64xf32>,
    return
  }
}

</mosaic_0001>

<bundles_post_ra>
// kernel: generative_forward.1
= control target key start
LH: loop header
LB: loop body
LE: loop exit
PB: predicated region body
PF: predicated region fallthrough
CT: control target
= control target key end

     0   :  { %v2294_v0 = vmov 0.0   ;;  %s2295_s3 = smov 5   ;;  %vm2296_vm0 = vmmov 0   ;;  %s2297_s10 = smov 1   ;;  %vm146_vm1 = vcmask 1045504   ;;  %vm142_vm2 = vcmask 48128   ;;  %s2759_s0 = inlined_call_operand.smem [shape: u32[32], index: -1, kind: input, shape index: {}] }
   0x1   :  { %1982 = vmatprep.subr.mxu0 %v2294_v0  ;;  %s1808_s6 = sld [smem:[%s2759_s0 + %s2295_s3]]   ;;  %1984 = vmatprep.mubr.msk.f32.mxu0 %vm2296_vm0, %v2294_v0  ;;  %s2298_s14 = smov 32   ;;  %vm225_vm3 = vcmask 261120   ;;  %vm227_vm4 = vcmask 64512   ;;  %v2305_v31 = vmov 0   ;;  %vm321_vm5 = vcmask 523264  }
   0x2   :  { %s1_s9 = sld [smem:[%s2759_s0]]   ;;  %1987 = vmatprep.subr.mxu1 %v2294_v0  ;;  %1989 = vmatprep.mubr.msk.f32.mxu1 %vm2296_vm0, %v2294_v0  ;;  %s2299_s15 = smov 96   ;;  %vm698_vm6 = vcmask 785408   ;;  %vm990_vm9 = vcmask 130048   ;;  %vm1785_vm12 = vcmask 392192   ;;  %vm1788_vm13 = vcmask 654336  }
   0x3   :  { %s1804_s13 = sld [smem:[%s2759_s0 + %s2297_s10]]   ;;  %s2300_s16 = smov 6   ;;  %2273 = vset.pattern.permute.xlu0 %v2305_v31 }
   0x4   :  { %s1809_s19 = sld [smem:[%s2759_s0 + %s2300_s16]]   ;;  %s2301_s20 = smov 3  }
   0x5   :  { %s1806_s23 = sld [smem:[%s2759_s0 + %s2301_s20]]   ;;  %s2302_s24 = smov 64  }
   0x6   :  { %s2303_s25 = smov 20   ;;  %s2304_s29 = smov 26  }
   0x7   :  { %v134_v1 = vld [vmem:[%s1808_s6] sm:$0x3f]  ;;  %s2383_s28 = sld [smem:[%s2759_s0 + %s2303_s25]]   ;;  %s2306_s3 = smov 2  }
   0x8   :  { %1983 = vmatpush3.msk.msra.mxu0 %vm146_vm1, %v134_v1  ;;  %v129_v2 = vld [vmem:[%s1_s9] sm:$0xff]  ;;  %s2388_s2 = sld [smem:[%s2759_s0 + %s2304_s29]]   ;;  %s2307_s7 = smov 13  }
   0x9   :  { %1985 = vmatmul.mubr.msk.f32.vlgmr.msra.gmra.mxu0 %vm142_vm2, %v129_v2  ;;  %v2352_v3 = vld [vmem:[%s1804_s13] sm:$0xff]  ;;  %1992 = vmatprep.subr.mxu0 %v2294_v0  ;;  %s1805_s6 = sld [smem:[%s2759_s0 + %s2306_s3]]   ;;  %s2308_s11 = smov 9  }
   0xa   :  { %222 = vrot.lane.b32.xlu0 %v2352_v3, %s2298_s14  ;;  %2008 = vmatprep.mubr.msk.f32.mxu0 %vm2296_vm0, %v2294_v0  ;;  %v1835_v4 = vld [vmem:[%s1809_s19] ss:$0 sm:$0xff]  ;;  %s1816_s10 = sld [smem:[%s2759_s0 + %s2307_s7]]   ;;  %s2309_s17 = smov 16  }
   0xb   :  { %504 = vrot.lane.b32.xlu1 %v2352_v3, %s2299_s15  ;;  %v2369_v10 = vld [vmem:[%s1806_s23] sm:$0xff]  ;;  %s2441_s16 = sld [smem:[%s2759_s0 + %s2308_s11]]   ;;  %s2310_s21 = smov 14  }
   0xc   :  { %s1819_s20 = sld [smem:[%s2759_s0 + %s2309_s17]]   ;;  %s2311_s26 = smov 15  }
   0xd   :  { %v313_v13 = vld [vmem:[%s2383_s28 + $0x38] sm:$0xff]  ;;  %v312_v14 = vld [vmem:[%s2383_s28 + $0x30] sm:$0xff]  ;;  %v311_v17 = vld [vmem:[%s2383_s28 + $0x28] sm:$0xff]  ;;  %s1817_s25 = sld [smem:[%s2759_s0 + %s2310_s21]]   ;;  %s2312_s30 = smov 10  }
   0xe   :  { %1993 = vmatpush3.msra.mxu0 %v313_v13  ;;  %v406_v15 = vld [vmem:[%s2388_s2 + $0x38] sm:$0xff]  ;;  %v405_v16 = vld [vmem:[%s2388_s2 + $0x30] sm:$0xff]  ;;  %v404_v18 = vld [vmem:[%s2388_s2 + $0x28] sm:$0xff]  ;;  %s1818_s29 = sld [smem:[%s2759_s0 + %s2311_s26]]   ;;  %s2313_s4 = smov 11  }
   0xf   :  { %1994 = vmatprep.subr.mxu0 %v2294_v0  ;;  %v310_v19 = vld [vmem:[%s2383_s28 + $0x20] sm:$0xff]  ;;  %v309_v21 = vld [vmem:[%s2383_s28 + $0x18] sm:$0xff]  ;;  %v308_v23 = vld [vmem:[%s2383_s28 + $0x10] sm:$0xff]  ;;  %s1813_s3 = sld [smem:[%s2759_s0 + %s2312_s30]]   ;;  %s2314_s8 = smov 12  }
  0x10   :  { %1995 = vmatpush3.msra.mxu0 %v312_v14  ;;  %v403_v20 = vld [vmem:[%s2388_s2 + $0x20] sm:$0xff]  ;;  %v402_v22 = vld [vmem:[%s2388_s2 + $0x18] sm:$0xff]  ;;  %v401_v24 = vld [vmem:[%s2388_s2 + $0x10] sm:$0xff]  ;;  %s1814_s7 = sld [smem:[%s2759_s0 + %s2313_s4]]   ;;  %s2315_s12 = smov 7  }
  0x11   :  { %1996 = vmatprep.subr.mxu0 %v2294_v0  ;;  %v307_v25 = vld [vmem:[%s2383_s28 + $0x8] sm:$0xff]  ;;  %v306_v27 = vld [vmem:[%s2383_s28] sm:$0xff]  ;;  %v490_v37 = vld [vmem:[%s1816_s10 + $0x18] sm:$0xff]  ;;  %s1815_s11 = sld [smem:[%s2759_s0 + %s2314_s8]]   ;;  %s2316_s18 = smov 112  }
  0x12   :  { %1997 = vmatpush3.msra.mxu0 %v311_v17  ;;  %v400_v26 = vld [vmem:[%s2388_s2 + $0x8] sm:$0xff]  ;;  %v399_v28 = vld [vmem:[%s2388_s2] sm:$0xff]  ;;  %v489_v40 = vld [vmem:[%s1816_s10 + $0x10] sm:$0xff]  ;;  %s1810_s17 = sld [smem:[%s2759_s0 + %s2315_s12]]   ;;  %s2317_s19 = smov 4  }
  0x13   :  { %1998 = vmatprep.subr.mxu0 %v2294_v0  ;;  %v131_v32 = vld [vmem:[%s1805_s6] sm:$0xff]  ;;  %v488_v41 = vld [vmem:[%s1816_s10 + $0x8] sm:$0xff]  ;;  %v715_v43 = vld [vmem:[%s2441_s16 + $0x78] sm:$0xff]  ;;  %s1807_s22 = sld [smem:[%s2759_s0 + %s2317_s19]]   ;;  %s2318_s23 = smov 8  }
  0x14   :  { %1999 = vmatpush3.msra.mxu0 %v310_v19  ;;  %v487_v42 = vld [vmem:[%s1816_s10] sm:$0xff]  ;;  %v714_v44 = vld [vmem:[%s2441_s16 + $0x70] sm:$0xff]  ;;  %v713_v45 = vld [vmem:[%s2441_s16 + $0x68] sm:$0xff]  ;;  %s1811_s27 = sld [smem:[%s2759_s0 + %s2318_s23]]   ;;  %s2319_s28 = smov 18  }
  0x15   :  { %2000 = vmatprep.subr.mxu0 %v2294_v0  ;;  %v712_v46 = vld [vmem:[%s2441_s16 + $0x60] sm:$0xff]  ;;  %v711_v47 = vld [vmem:[%s2441_s16 + $0x58] sm:$0xff]  ;;  %v710_v48 = vld [vmem:[%s2441_s16 + $0x50] sm:$0xff]  ;;  %s2589_s1 = sld [smem:[%s2759_s0 + %s2319_s28]]   ;;  %s2320_s2 = smov 21  }
  0x16   :  { %2001 = vmatpush3.msra.mxu0 %v309_v21  ;;  %v709_v49 = vld [vmem:[%s2441_s16 + $0x48] sm:$0xff]  ;;  %v708_v50 = vld [vmem:[%s2441_s16 + $0x40] sm:$0xff]  ;;  %v707_v51 = vld [vmem:[%s2441_s16 + $0x38] sm:$0xff]  ;;  %s1824_s5 = sld [smem:[%s2759_s0 + %s2320_s2]]   ;;  %s2321_s6 = smov 19  }
  0x17   :  { %2002 = vmatprep.subr.mxu0 %v2294_v0  ;;  %v706_v52 = vld [vmem:[%s2441_s16 + $0x30] sm:$0xff]  ;;  %v705_v53 = vld [vmem:[%s2441_s16 + $0x28] sm:$0xff]  ;;  %v704_v54 = vld [vmem:[%s2441_s16 + $0x20] sm:$0xff]  ;;  %s1822_s9 = sld [smem:[%s2759_s0 + %s2321_s6]]   ;;  %s2322_s10 = smov 22  }
  0x18   :  { %2003 = vmatpush3.msra.mxu0 %v308_v23  ;;  %v703_v55 = vld [vmem:[%s2441_s16 + $0x18] sm:$0xff]  ;;  %v702_v56 = vld [vmem:[%s2441_s16 + $0x10] sm:$0xff]  ;;  %v701_v59 = vld [vmem:[%s2441_s16 + $0x8] sm:$0xff]  ;;  %s1825_s13 = sld [smem:[%s2759_s0 + %s2322_s10]]   ;;  %s2329_s10 = smov 17  }
  0x19   :  { %2004 = vmatprep.subr.mxu0 %v2294_v0  ;;  %v700_v61 = vld [vmem:[%s2441_s16] sm:$0xff]  ;;  %v590_v1 = vld [vmem:[%s1819_s20 + $0x18] sm:$0xff]  ;;  %v589_v2 = vld [vmem:[%s1819_s20 + $0x10] sm:$0xff]  ;;  %s2323_s16 = smov 23  }
  0x1a   :  { %2005 = vmatpush3.msra.mxu0 %v307_v25  ;;  %v1843_v13 = vld [vmem:[%s1817_s25] ss:$0 sm:$0xff]  ;;  %v872_v31 = vld [vmem:[%s1814_s7 + $0x18] sm:$0xff]  ;;  %s1826_s19 = sld [smem:[%s2759_s0 + %s2323_s16]]   ;;  %s2325_s25 = smov 27  }
  0x1b   :  { %2006 = vmatprep.subr.mxu0 %v2294_v0  ;;  %v1848_v21 = vld [vmem:[%s1813_s3] ss:$0 sm:$0xff]  ;;  %s1830_s28 = sld [smem:[%s2759_s0 + %s2325_s25]]   ;;  %s2327_s3 = smov 28  }
  0x1c   :  { %2007 = vmatpush3.msra.mxu0 %v306_v27  ;;  %v875_v27 = vld [vmem:[%s1814_s7 + $0x30] sm:$0xff]  ;;  %s1831_s6 = sld [smem:[%s2759_s0 + %s2327_s3]]  }
  0x1d   :  { %2030 = vmatprep.subr.mxu0 %v2294_v0 }
  0x7c   :  { %v2367_v8 = vpop.permute.xlu0 %222 }
  0x7d   :  { %v2431_v33 = vpop.permute.xlu1 %504 }
  0xc9   :  { %v216_v5 = vpop.f32.mrf.mxu0 }
  0xca   :  { %v217_v6 = vadd.f32 %v1835_v4, %v216_v5  ;;  %v588_v4 = vld [vmem:[%s1819_s20 + $0x8] sm:$0xff]  ;;  %v587_v5 = vld [vmem:[%s1819_s20] sm:$0xff]  ;;  %s2324_s20 = smov 24  }
  0xcb   :  { %v1986_v7 = vpop.f32.mrf.mxu0  ;;  %s2669_s23 = sld [smem:[%s2759_s0 + %s2324_s20]]  }
  0xcc   :  { %v220_v9 = vmax.f32 %v217_v6, 0.0 }
  0xce   :  { %v2268_v11 = vpack.i.bf16 %v2352_v3, %v220_v9  ;;  %v226_v12 = vsel %vm225_vm3, %v220_v9, %v2367_v8 }
  0xcf   :  { %1988 = vmatpush3.msra.mxu1 %v226_v12 }
  0xd0   :  { %2269 = vrot.lane.b32.xlu1 %v2268_v11, %s2302_s24  ;;  %1990 = vmatmul.mubr.msk.f32.vlgmr.msra.gmra.mxu1 %vm227_vm4, %v2369_v10 }
  0xd1   :  { %2011 = vmatprep.subr.mxu1 %v2294_v0  ;;  %2027 = vmatprep.mubr.msk.f32.mxu1 %vm2296_vm0, %v2294_v0 }
  0xd2   :  { %2012 = vmatpush3.msra.mxu1 %v406_v15 }
  0xd3   :  { %2013 = vmatprep.subr.mxu1 %v2294_v0 }
  0xd4   :  { %2014 = vmatpush3.msra.mxu1 %v405_v16  ;;  %v1845_v16 = vld [vmem:[%s1818_s29] ss:$0 sm:$0xff]  ;;  %s2326_s29 = smov 25  }
  0xd5   :  { %2015 = vmatprep.subr.mxu1 %v2294_v0  ;;  %s1828_s2 = sld [smem:[%s2759_s0 + %s2326_s29]]  }
  0xd6   :  { %2016 = vmatpush3.msra.mxu1 %v404_v18 }
  0xd7   :  { %2017 = vmatprep.subr.mxu1 %v2294_v0 }
  0xd8   :  { %2018 = vmatpush3.msra.mxu1 %v403_v20 }
  0xd9   :  { %2019 = vmatprep.subr.mxu1 %v2294_v0 }
  0xda   :  { %2020 = vmatpush3.msra.mxu1 %v402_v22 }
  0xdb   :  { %2021 = vmatprep.subr.mxu1 %v2294_v0 }
  0xdc   :  { %2022 = vmatpush3.msra.mxu1 %v401_v24 }
  0xdd   :  { %2023 = vmatprep.subr.mxu1 %v2294_v0 }
  0xde   :  { %2024 = vmatpush3.msra.mxu1 %v400_v26  ;;  %v876_v26 = vld [vmem:[%s1814_s7 + $0x38] sm:$0xff] }
  0xdf   :  { %2025 = vmatprep.subr.mxu1 %v2294_v0 }
  0xe0   :  { %2026 = vmatpush3.msra.mxu1 %v399_v28  ;;  %v874_v28 = vld [vmem:[%s1814_s7 + $0x28] sm:$0xff] }
  0xe1   :  { %2041 = vmatprep.subr.mxu1 %v2294_v0 }
 0x142   :  { %v2436_v34 = vpop.permute.xlu1 %2269 }
 0x143   :  { %v2271_v58 = vunpack.i.l.bf16 %v2436_v34  ;;  %v2272_v62 = vunpack.i.h.bf16 %v2436_v34  ;;  %v1855_v34 = vld [vmem:[%s1822_s9] ss:$0 sm:$0xff] }
 0x190   :  { %v2422_v29 = vpop.f32.mrf.mxu1 }
 0x191   :  { %395 = vrot.lane.b32.xlu1 %v2422_v29, %s2302_s24  ;;  %302 = vrot.lane.b32.xlu0 %v2422_v29, %s2299_s15 }
 0x192   :  { %v1991_v30 = vpop.f32.mrf.mxu1 }
 0x193   :  { %v873_v30 = vld [vmem:[%s1814_s7 + $0x20] sm:$0xff] }
 0x195   :  { %494 = vperm.xlu0 %2273, %v131_v32   ;;  %v871_v32 = vld [vmem:[%s1814_s7 + $0x10] sm:$0xff] }
 0x203   :  { %v396_v35 = vpop.permute.xlu1 %395  ;;  %v303_v36 = vpop.permute.xlu0 %302 }
 0x204   :  { %v398_v38 = vsel %vm225_vm3, %v396_v35, %v2352_v3  ;;  %v305_v39 = vsel %vm225_vm3, %v303_v36, %v2367_v8  ;;  %v696_v57 = vsel %vm225_vm3, %v2422_v29, %v303_v36  ;;  %v870_v35 = vld [vmem:[%s1814_s7 + $0x8] sm:$0xff]  ;;  %v869_v36 = vld [vmem:[%s1814_s7] sm:$0xff] }
 0x205   :  { %2009 = vmatmul.mubr.msk.f32.vlgmr.msra.gmra.mxu0 %vm321_vm5, %v305_v39  ;;  %2028 = vmatmul.mubr.msk.f32.vlgmr.msra.gmra.mxu1 %vm321_vm5, %v398_v38  ;;  %v697_v60 = vsel %vm321_vm5, %v696_v57, %v2271_v58 }
 0x206   :  { %2031 = vmatpush3.msra.mxu0 %v490_v37  ;;  %2038 = vmatprep.mubr.msk.f32.mxu0 %vm2296_vm0, %v2294_v0  ;;  %v699_v63 = vsel %vm698_vm6, %v697_v60, %v2272_v62 }
 0x207   :  { %2032 = vmatprep.subr.mxu0 %v2294_v0  ;;  %2049 = vmatprep.mubr.msk.f32.mxu1 %vm2296_vm0, %v2294_v0 }
 0x208   :  { %2033 = vmatpush3.msra.mxu0 %v489_v40  ;;  %2042 = vmatpush3.msra.mxu1 %v590_v1 }
 0x209   :  { %2034 = vmatprep.subr.mxu0 %v2294_v0  ;;  %2043 = vmatprep.subr.mxu1 %v2294_v0 }
 0x20a   :  { %2035 = vmatpush3.msra.mxu0 %v488_v41  ;;  %2044 = vmatpush3.msra.mxu1 %v589_v2  ;;  %v133_v2 = vld [vmem:[%s1807_s22] sm:$0xff] }
 0x20b   :  { %2036 = vmatprep.subr.mxu0 %v2294_v0  ;;  %2045 = vmatprep.subr.mxu1 %v2294_v0 }
 0x20c   :  { %2037 = vmatpush3.msra.mxu0 %v487_v42  ;;  %2046 = vmatpush3.msra.mxu1 %v588_v4 }
 0x20d   :  { %2039 = vmatmul.mubr.msk.f32.vlgmr.msra.gmra.mxu0 %vm225_vm3, %v2431_v33  ;;  %2052 = vmatprep.subr.mxu0 %v2294_v0 }
 0x20e   :  { %2053 = vmatpush3.msra.mxu0 %v715_v43  ;;  %2084 = vmatprep.mubr.msk.f32.mxu0 %vm2296_vm0, %v2294_v0  ;;  %v1850_v43 = vld [vmem:[%s1815_s11] ss:$0 sm:$0xff] }
 0x20f   :  { %2054 = vmatprep.subr.mxu0 %v2294_v0  ;;  %2047 = vmatprep.subr.mxu1 %v2294_v0 }
 0x210   :  { %2055 = vmatpush3.msra.mxu0 %v714_v44  ;;  %2048 = vmatpush3.msra.mxu1 %v587_v5  ;;  %v495_v9 = vpop.permute.xlu0 %494 }
 0x211   :  { %2056 = vmatprep.subr.mxu0 %v2294_v0  ;;  %2092 = vmatprep.subr.mxu1 %v2294_v0  ;;  %v503_v14 = vmul.f32 %v1843_v13, %v495_v9 }
 0x212   :  { %2057 = vmatpush3.msra.mxu0 %v713_v45 }
 0x213   :  { %2058 = vmatprep.subr.mxu0 %v2294_v0 }
 0x214   :  { %2059 = vmatpush3.msra.mxu0 %v712_v46 }
 0x215   :  { %2060 = vmatprep.subr.mxu0 %v2294_v0 }
 0x216   :  { %2061 = vmatpush3.msra.mxu0 %v711_v47 }
 0x217   :  { %2062 = vmatprep.subr.mxu0 %v2294_v0 }
 0x218   :  { %2063 = vmatpush3.msra.mxu0 %v710_v48 }
 0x219   :  { %2064 = vmatprep.subr.mxu0 %v2294_v0 }
 0x21a   :  { %2065 = vmatpush3.msra.mxu0 %v709_v49 }
 0x21b   :  { %2066 = vmatprep.subr.mxu0 %v2294_v0 }
 0x21c   :  { %2067 = vmatpush3.msra.mxu0 %v708_v50 }
 0x21d   :  { %2068 = vmatprep.subr.mxu0 %v2294_v0 }
 0x21e   :  { %2069 = vmatpush3.msra.mxu0 %v707_v51 }
 0x21f   :  { %2070 = vmatprep.subr.mxu0 %v2294_v0 }
 0x220   :  { %2071 = vmatpush3.msra.mxu0 %v706_v52 }
 0x221   :  { %2072 = vmatprep.subr.mxu0 %v2294_v0 }
 0x222   :  { %2073 = vmatpush3.msra.mxu0 %v705_v53  ;;  %v982_v53 = vld [vmem:[%s1810_s17 + $0x8] sm:$0xff] }
 0x223   :  { %2074 = vmatprep.subr.mxu0 %v2294_v0 }
 0x224   :  { %2075 = vmatpush3.msra.mxu0 %v704_v54  ;;  %v981_v54 = vld [vmem:[%s1810_s17] sm:$0xff] }
 0x225   :  { %2076 = vmatprep.subr.mxu0 %v2294_v0 }
 0x226   :  { %2077 = vmatpush3.msra.mxu0 %v703_v55 }
 0x227   :  { %2078 = vmatprep.subr.mxu0 %v2294_v0 }
 0x228   :  { %2079 = vmatpush3.msra.mxu0 %v702_v56 }
 0x229   :  { %2080 = vmatprep.subr.mxu0 %v2294_v0 }
 0x22a   :  { %2081 = vmatpush3.msra.mxu0 %v701_v59 }
 0x22b   :  { %2082 = vmatprep.subr.mxu0 %v2294_v0 }
 0x22c   :  { %2083 = vmatpush3.msra.mxu0 %v700_v61 }
 0x22d   :  { %2085 = vmatmul.mubr.f32.vlgmr.msra.gmra.mxu0 %v699_v63  ;;  %2087 = vmatprep.subr.mxu0 %v2294_v0 }
 0x22e   :  { %2089 = vmatprep.mubr.msk.f32.mxu0 %vm2296_vm0, %v2294_v0 }
 0x2c5   :  { %v2513_v6 = vpop.f32.mrf.mxu0  ;;  %v2515_v7 = vpop.f32.mrf.mxu1 }
 0x2c7   :  { %v2010_v11 = vpop.f32.mrf.mxu0  ;;  %v2029_v12 = vpop.f32.mrf.mxu1 }
 0x2c8   :  { %v1852_v11 = vld [vmem:[%s1811_s27] ss:$0 sm:$0xff] }
 0x2cd   :  { %v574_v15 = vpop.f32.mrf.mxu0 }
 0x2ce   :  { %v575_v17 = vadd.f32 %v574_v15, %v503_v14 }
 0x2cf   :  { %v2040_v18 = vpop.f32.mrf.mxu0 }
 0x2d0   :  { %v585_v19 = vadd.f32 %v1845_v16, %v575_v17  ;;  %v1161_v16 = vld [vmem:[%s2589_s1 + $0x78] sm:$0xff]  ;;  %v1160_v17 = vld [vmem:[%s2589_s1 + $0x70] sm:$0xff]  ;;  %v1159_v18 = vld [vmem:[%s2589_s1 + $0x68] sm:$0xff] }
 0x2d2   :  { %v586_v20 = vmax.f32 %v585_v19, 0.0  ;;  %v1158_v19 = vld [vmem:[%s2589_s1 + $0x60] sm:$0xff] }
 0x2d4   :  { %2050 = vmatmul.mubr.msk.f32.vlgmr.msra.gmra.mxu1 %vm225_vm3, %v586_v20  ;;  %v1157_v20 = vld [vmem:[%s2589_s1 + $0x58] sm:$0xff] }
 0x2d5   :  { %2108 = vmatprep.mubr.msk.f32.mxu1 %vm2296_vm0, %v2294_v0  ;;  %2093 = vmatpush3.msra.mxu1 %v876_v26  ;;  %v1151_v26 = vld [vmem:[%s2589_s1 + $0x28] sm:$0xff] }
 0x2d6   :  { %2094 = vmatprep.subr.mxu1 %v2294_v0 }
 0x2d7   :  { %2095 = vmatpush3.msra.mxu1 %v875_v27  ;;  %v1150_v27 = vld [vmem:[%s2589_s1 + $0x20] sm:$0xff] }
 0x2d8   :  { %2096 = vmatprep.subr.mxu1 %v2294_v0 }
 0x2d9   :  { %2097 = vmatpush3.msra.mxu1 %v874_v28  ;;  %v1149_v28 = vld [vmem:[%s2589_s1 + $0x18] sm:$0xff] }
 0x2da   :  { %2098 = vmatprep.subr.mxu1 %v2294_v0 }
 0x2db   :  { %2099 = vmatpush3.msra.mxu1 %v873_v30  ;;  %v1148_v30 = vld [vmem:[%s2589_s1 + $0x10] sm:$0xff] }
 0x2dc   :  { %2100 = vmatprep.subr.mxu1 %v2294_v0 }
 0x2dd   :  { %2101 = vmatpush3.msra.mxu1 %v872_v31  ;;  %v1147_v31 = vld [vmem:[%s2589_s1 + $0x8] sm:$0xff] }
 0x2de   :  { %2102 = vmatprep.subr.mxu1 %v2294_v0 }
 0x2df   :  { %2103 = vmatpush3.msra.mxu1 %v871_v32  ;;  %v1146_v32 = vld [vmem:[%s2589_s1] sm:$0xff] }
 0x2e0   :  { %2104 = vmatprep.subr.mxu1 %v2294_v0 }
 0x2e1   :  { %2105 = vmatpush3.msra.mxu1 %v870_v35 }
 0x2e2   :  { %2106 = vmatprep.subr.mxu1 %v2294_v0 }
 0x2e3   :  { %2107 = vmatpush3.msra.mxu1 %v869_v36 }
 0x2e4   :  { %2111 = vmatprep.subr.mxu1 %v2294_v0 }
 0x2ed   :  { %v789_v22 = vpop.f32.mrf.mxu0 }
 0x2ee   :  { %v790_v23 = vadd.f32 %v1848_v21, %v789_v22  ;;  %v1156_v21 = vld [vmem:[%s2589_s1 + $0x50] sm:$0xff]  ;;  %v1155_v22 = vld [vmem:[%s2589_s1 + $0x48] sm:$0xff] }
 0x2ef   :  { %v2086_v24 = vpop.f32.mrf.mxu0 }
 0x2f0   :  { %v793_v25 = vmax.f32 %v790_v23, 0.0  ;;  %v1154_v23 = vld [vmem:[%s2589_s1 + $0x40] sm:$0xff]  ;;  %v1153_v24 = vld [vmem:[%s2589_s1 + $0x38] sm:$0xff] }
 0x2f2   :  { %865 = vrot.lane.b32.xlu1 %v793_v25, %s2298_s14  ;;  %2088 = vmatpush3.msra.mxu0 %v793_v25  ;;  %v1152_v25 = vld [vmem:[%s2589_s1 + $0x30] sm:$0xff] }
 0x2f3   :  { %2090 = vmatmul.mubr.msk.f32.vlgmr.msra.gmra.mxu0 %vm227_vm4, %v2369_v10  ;;  %2158 = vmatprep.subr.mxu0 %v2294_v0 }
 0x2f4   :  { %2160 = vmatprep.mubr.msk.f32.mxu0 %vm2296_vm0, %v2294_v0 }
 0x364   :  { %v866_v39 = vpop.permute.xlu1 %865 }
 0x394   :  { %v2543_v37 = vpop.f32.mrf.mxu1 }
 0x396   :  { %v2051_v38 = vpop.f32.mrf.mxu1 }
 0x3b3   :  { %v860_v40 = vpop.f32.mrf.mxu0 }
 0x3b4   :  { %v868_v41 = vsel %vm225_vm3, %v860_v40, %v866_v39 }
 0x3b5   :  { %v2091_v42 = vpop.f32.mrf.mxu0  ;;  %2109 = vmatmul.mubr.msk.f32.vlgmr.msra.gmra.mxu1 %vm321_vm5, %v868_v41 }
 0x3b6   :  { %2115 = vmatprep.mubr.msk.f32.mxu1 %vm2296_vm0, %v2294_v0  ;;  %2112 = vmatpush3.msra.mxu1 %v982_v53 }
 0x3b7   :  { %2113 = vmatprep.subr.mxu1 %v2294_v0 }
 0x3b8   :  { %2114 = vmatpush3.msra.mxu1 %v981_v54  ;;  %v1328_v54 = vld [vmem:[%s1825_s13 + $0x30] sm:$0xff] }
 0x3b9   :  { %2118 = vmatprep.subr.mxu1 %v2294_v0 }
 0x475   :  { %v953_v44 = vpop.f32.mrf.mxu1 }
 0x476   :  { %v2552_v45 = vadd.f32 %v1850_v43, %v953_v44 }
 0x477   :  { %v2110_v46 = vpop.f32.mrf.mxu1 }
 0x478   :  { %v960_v47 = vand.u32 2147483647, %v2552_v45  ;;  %v957_v61 = vmax.f32 %v2552_v45, 0.0  ;;  %vm958_vm8 = vcmp.ne.f32.partialorder %v2552_v45, %v2552_v45 }
 0x47a   :  { %v961_v48 = vsub.f32 0.0, %v960_v47 }
 0x47c   :  { %v962_v49 = vmul.f32 1.442695, %v961_v48 }
 0x47e   :  { %2274 = vpow2.f32 %v962_v49 }
 0x48b   :  { %v2275_v50 = vpop.eup %2274 }
 0x48c   :  { %v964_v51 = vadd.f32 1.0, %v2275_v50  ;;  %v967_v52 = vmul.f32 -0.5, %v2275_v50  ;;  %v970_v56 = vand.u32 2147483647, %v2275_v50 }
 0x48e   :  { %2276 = vlog2.f32 %v964_v51  ;;  %v968_v55 = vadd.f32 1.0, %v967_v52  ;;  %vm971_vm7 = vcmp.lt.f32.partialorder %v970_v56, 0.0004427343  ;;  %v1325_v56 = vld [vmem:[%s1825_s13 + $0x18] sm:$0xff] }
 0x490   :  { %v969_v60 = vmul.f32 %v2275_v50, %v968_v55  ;;  %v1326_v55 = vld [vmem:[%s1825_s13 + $0x20] sm:$0xff] }
 0x49b   :  { %v2277_v57 = vpop.eup %2276 }
 0x49c   :  { %v966_v59 = vmul.f32 0.6931472, %v2277_v57  ;;  %v1324_v57 = vld [vmem:[%s1825_s13 + $0x10] sm:$0xff] }
 0x49e   :  { %v972_v62 = vsel %vm971_vm7, %v969_v60, %v966_v59  ;;  %v1323_v59 = vld [vmem:[%s1825_s13 + $0x8] sm:$0xff]  ;;  %v1322_v60 = vld [vmem:[%s1825_s13] sm:$0xff] }
 0x49f   :  { %v973_v63 = vadd.f32 %v972_v62, %v957_v61 }
 0x4a1   :  { %v2564_v1 = vsel %vm958_vm8, %v2552_v45, %v973_v63 }
 0x4a2   :  { %976 = vrot.lane.b32.xlu0 %v2564_v1, %s2316_s18 }
 0x514   :  { %v977_v4 = vpop.permute.xlu0 %976 }
 0x515   :  { %v979_v5 = vmul.f32 %v977_v4, %v133_v2  ;;  %v1858_v2 = vld [vmem:[%s1826_s19] ss:$0 sm:$0xff]  ;;  %s2331_s19 = smov 31  }
 0x516   :  { %s1834_s22 = sld [smem:[%s2759_s0 + %s2331_s19]]  }
 0x517   :  { %v2571_v9 = vadd.f32 %v979_v5, %v2552_v45 }
 0x519   :  { %2116 = vmatmul.mubr.msk.f32.vlgmr.msra.gmra.mxu1 %vm990_vm9, %v2571_v9 }
 0x51a   :  { %2120 = vmatprep.mubr.msk.f32.mxu1 %vm2296_vm0, %v2294_v0 }
 0x5d9   :  { %v1060_v12 = vpop.f32.mrf.mxu1 }
 0x5da   :  { %v1061_v13 = vadd.f32 %v1852_v11, %v1060_v12 }
 0x5db   :  { %v2117_v14 = vpop.f32.mrf.mxu1 }
 0x5dc   :  { %v1064_v15 = vmax.f32 %v1061_v13, 0.0 }
 0x5de   :  { %1140 = vrot.lane.b32.xlu0 %v1064_v15, %s2299_s15  ;;  %2119 = vmatpush3.msra.mxu1 %v1064_v15 }
 0x5df   :  { %2121 = vmatmul.mubr.msk.f32.vlgmr.msra.gmra.mxu1 %vm227_vm4, %v2369_v10  ;;  %2123 = vmatprep.subr.mxu1 %v2294_v0 }
 0x5e0   :  { %2155 = vmatprep.mubr.msk.f32.mxu1 %vm2296_vm0, %v2294_v0  ;;  %2124 = vmatpush3.msra.mxu1 %v1161_v16 }
 0x5e1   :  { %2125 = vmatprep.subr.mxu1 %v2294_v0 }
 0x5e2   :  { %2126 = vmatpush3.msra.mxu1 %v1160_v17 }
 0x5e3   :  { %2127 = vmatprep.subr.mxu1 %v2294_v0 }
 0x5e4   :  { %2128 = vmatpush3.msra.mxu1 %v1159_v18 }
 0x5e5   :  { %2129 = vmatprep.subr.mxu1 %v2294_v0 }
 0x5e6   :  { %2130 = vmatpush3.msra.mxu1 %v1158_v19 }
 0x5e7   :  { %2131 = vmatprep.subr.mxu1 %v2294_v0 }
 0x5e8   :  { %2132 = vmatpush3.msra.mxu1 %v1157_v20  ;;  %v1506_v20 = vld [vmem:[%s2669_s23 + $0x38] sm:$0xff] }
 0x5e9   :  { %2133 = vmatprep.subr.mxu1 %v2294_v0 }
 0x5ea   :  { %2134 = vmatpush3.msra.mxu1 %v1156_v21  ;;  %v1505_v21 = vld [vmem:[%s2669_s23 + $0x30] sm:$0xff] }
 0x5eb   :  { %2135 = vmatprep.subr.mxu1 %v2294_v0 }
 0x5ec   :  { %2136 = vmatpush3.msra.mxu1 %v1155_v22  ;;  %v1504_v22 = vld [vmem:[%s2669_s23 + $0x28] sm:$0xff] }
 0x5ed   :  { %2137 = vmatprep.subr.mxu1 %v2294_v0 }
 0x5ee   :  { %2138 = vmatpush3.msra.mxu1 %v1154_v23  ;;  %v1503_v23 = vld [vmem:[%s2669_s23 + $0x20] sm:$0xff] }
 0x5ef   :  { %2139 = vmatprep.subr.mxu1 %v2294_v0 }
 0x5f0   :  { %2140 = vmatpush3.msra.mxu1 %v1153_v24  ;;  %v1502_v24 = vld [vmem:[%s2669_s23 + $0x18] sm:$0xff] }
 0x5f1   :  { %2141 = vmatprep.subr.mxu1 %v2294_v0 }
 0x5f2   :  { %2142 = vmatpush3.msra.mxu1 %v1152_v25  ;;  %v1501_v25 = vld [vmem:[%s2669_s23 + $0x10] sm:$0xff] }
 0x5f3   :  { %2143 = vmatprep.subr.mxu1 %v2294_v0 }
 0x5f4   :  { %2144 = vmatpush3.msra.mxu1 %v1151_v26  ;;  %v1500_v26 = vld [vmem:[%s2669_s23 + $0x8] sm:$0xff] }
 0x5f5   :  { %2145 = vmatprep.subr.mxu1 %v2294_v0 }
 0x5f6   :  { %2146 = vmatpush3.msra.mxu1 %v1150_v27  ;;  %v1499_v27 = vld [vmem:[%s2669_s23] sm:$0xff] }
 0x5f7   :  { %2147 = vmatprep.subr.mxu1 %v2294_v0 }
 0x5f8   :  { %2148 = vmatpush3.msra.mxu1 %v1149_v28 }
 0x5f9   :  { %2149 = vmatprep.subr.mxu1 %v2294_v0 }
 0x5fa   :  { %2150 = vmatpush3.msra.mxu1 %v1148_v30 }
 0x5fb   :  { %2151 = vmatprep.subr.mxu1 %v2294_v0 }
 0x5fc   :  { %2152 = vmatpush3.msra.mxu1 %v1147_v31 }
 0x5fd   :  { %2153 = vmatprep.subr.mxu1 %v2294_v0 }
 0x5fe   :  { %2154 = vmatpush3.msra.mxu1 %v1146_v32 }
 0x5ff   :  { %2206 = vmatprep.subr.mxu1 %v2294_v0 }
 0x650   :  { %v1141_v40 = vpop.permute.xlu0 %1140 }
 0x69f   :  { %v1131_v35 = vpop.f32.mrf.mxu1 }
 0x6a0   :  { %1136 = vrot.lane.b32.xlu1 %v1131_v35, %s2298_s14  ;;  %v1841_v35 = vld [vmem:[%s1830_s28] ss:$0 sm:$0xff] }
 0x6a1   :  { %v2122_v36 = vpop.f32.mrf.mxu1 }
 0x6a2   :  { %v1861_v36 = vld [vmem:[%s1828_s2] ss:$0 sm:$0xff] }
 0x712   :  { %v1137_v38 = vpop.permute.xlu1 %1136 }
 0x713   :  { %v1143_v39 = vsel %vm225_vm3, %v2422_v29, %v1137_v38  ;;  %v1839_v29 = vld [vmem:[%s1824_s5] ss:$0 sm:$0xff] }
 0x714   :  { %v1144_v41 = vsel %vm321_vm5, %v1143_v39, %v2271_v58  ;;  %v392_v58 = vadd.f32 %v1839_v29, %v2513_v6  ;;  %v1329_v6 = vld [vmem:[%s1825_s13 + $0x38] sm:$0xff]  ;;  %v484_v39 = vadd.f32 %v1841_v35, %v2515_v7 }
 0x715   :  { %v1145_v42 = vsel %vm698_vm6, %v1144_v41, %v1141_v40 }
 0x716   :  { %2156 = vmatmul.mubr.f32.vlgmr.msra.gmra.mxu1 %v1145_v42 }
 0x717   :  { %2208 = vmatprep.mubr.msk.f32.mxu1 %vm2296_vm0, %v2294_v0 }
 0x7d6   :  { %v1235_v43 = vpop.f32.mrf.mxu1 }
 0x7d7   :  { %v1236_v44 = vadd.f32 %v1855_v34, %v1235_v43 }
 0x7d8   :  { %v2157_v46 = vpop.f32.mrf.mxu1 }
 0x7d9   :  { %v1239_v47 = vadd.f32 %v1236_v44, %v392_v58  ;;  %v1677_v46 = vld [vmem:[%s1831_s6 + $0x38] sm:$0xff] }
 0x7db   :  { %v1856_v48 = vmul.f32 -1.442695, %v1239_v47  ;;  %v1676_v47 = vld [vmem:[%s1831_s6 + $0x30] sm:$0xff] }
 0x7dd   :  { %2278 = vpow2.f32 %v1856_v48  ;;  %v1674_v48 = vld [vmem:[%s1831_s6 + $0x20] sm:$0xff] }
 0x7ea   :  { %v2279_v49 = vpop.eup %2278 }
 0x7eb   :  { %v1243_v50 = vadd.f32 1.0, %v2279_v49  ;;  %v1673_v49 = vld [vmem:[%s1831_s6 + $0x18] sm:$0xff] }
 0x7ed   :  { %2280 = vrcp.f32 %v1243_v50  ;;  %v1671_v50 = vld [vmem:[%s1831_s6 + $0x8] sm:$0xff] }
 0x7fa   :  { %v2281_v51 = vpop.eup %2280 }
 0x7fb   :  { %v1246_v52 = vmul.f32 %v2281_v51, %v2367_v8  ;;  %v1327_v8 = vld [vmem:[%s1825_s13 + $0x28] sm:$0xff]  ;;  %v1417_v15 = vsub.f32 1.0, %v2281_v51  ;;  %v1416_v17 = vmul.f32 %v2281_v51, %v2352_v3  ;;  %v1670_v51 = vld [vmem:[%s1831_s6] sm:$0xff]  ;;  %s1820_s13 = sld [smem:[%s2759_s0 + %s2329_s10]]  }
 0x7fd   :  { %1248 = vrot.lane.b32.xlu1 %v1246_v52, %s2299_s15 }
 0x86f   :  { %v1249_v53 = vpop.permute.xlu1 %1248 }
 0x870   :  { %2159 = vmatpush3.msra.mxu0 %v1249_v53 }
 0x871   :  { %2161 = vmatmul.mubr.msk.f32.vlgmr.msra.gmra.mxu0 %vm227_vm4, %v2369_v10  ;;  %2163 = vmatprep.subr.mxu0 %v2294_v0 }
 0x872   :  { %2164 = vmatpush3.msra.mxu0 %v1329_v6  ;;  %2179 = vmatprep.mubr.msk.f32.mxu0 %vm2296_vm0, %v2294_v0 }
 0x873   :  { %2165 = vmatprep.subr.mxu0 %v2294_v0 }
 0x874   :  { %2166 = vmatpush3.msra.mxu0 %v1328_v54 }
 0x875   :  { %2167 = vmatprep.subr.mxu0 %v2294_v0 }
 0x876   :  { %2168 = vmatpush3.msra.mxu0 %v1327_v8 }
 0x877   :  { %2169 = vmatprep.subr.mxu0 %v2294_v0 }
 0x878   :  { %2170 = vmatpush3.msra.mxu0 %v1326_v55 }
 0x879   :  { %2171 = vmatprep.subr.mxu0 %v2294_v0 }
 0x87a   :  { %2172 = vmatpush3.msra.mxu0 %v1325_v56 }
 0x87b   :  { %2173 = vmatprep.subr.mxu0 %v2294_v0 }
 0x87c   :  { %2174 = vmatpush3.msra.mxu0 %v1324_v57 }
 0x87d   :  { %2175 = vmatprep.subr.mxu0 %v2294_v0 }
 0x87e   :  { %2176 = vmatpush3.msra.mxu0 %v1323_v59 }
 0x87f   :  { %2177 = vmatprep.subr.mxu0 %v2294_v0 }
 0x880   :  { %2178 = vmatpush3.msra.mxu0 %v1322_v60  ;;  %v1846_v60 = vld [vmem:[%s1820_s13] ss:$0 sm:$0xff] }
 0x881   :  { %2182 = vmatprep.subr.mxu0 %v2294_v0 }
 0x931   :  { %v1317_v61 = vpop.f32.mrf.mxu0 }
 0x932   :  { %v1321_v62 = vsel %vm225_vm3, %v1317_v61, %v1246_v52 }
 0x933   :  { %v2162_v63 = vpop.f32.mrf.mxu0  ;;  %2180 = vmatmul.mubr.msk.f32.vlgmr.msra.gmra.mxu0 %vm321_vm5, %v1321_v62 }
 0x934   :  { %2184 = vmatprep.mubr.msk.f32.mxu0 %vm2296_vm0, %v2294_v0 }
 0x9f3   :  { %v1406_v4 = vpop.f32.mrf.mxu0 }
 0x9f4   :  { %v1407_v5 = vadd.f32 %v1858_v2, %v1406_v4 }
 0x9f5   :  { %v2181_v11 = vpop.f32.mrf.mxu0 }
 0x9f6   :  { %1411 = vrot.lane.b32.xlu0 %v1407_v5, %s2302_s24 }
 0xa68   :  { %v1412_v12 = vpop.permute.xlu0 %1411 }
 0xa69   :  { %v1414_v13 = vadd.f32 %v1412_v12, %v1236_v44 }
 0xa6b   :  { %2282 = vtanh.f32 %v1414_v13 }
 0xa78   :  { %v2283_v14 = vpop.eup %2282 }
 0xa79   :  { %1419 = vrot.lane.b32.xlu1 %v2283_v14, %s2302_s24 }
 0xaeb   :  { %v1420_v16 = vpop.permute.xlu1 %1419 }
 0xaec   :  { %v1422_v18 = vmul.f32 %v1420_v16, %v1417_v15 }
 0xaee   :  { %v2672_v19 = vadd.f32 %v1422_v18, %v1416_v17 }
 0xaf0   :  { %1495 = vrot.lane.b32.xlu0 %v2672_v19, %s2298_s14  ;;  %2183 = vmatpush3.msra.mxu0 %v2672_v19 }
 0xaf1   :  { %2185 = vmatmul.mubr.msk.f32.vlgmr.msra.gmra.mxu0 %vm227_vm4, %v2369_v10  ;;  %2187 = vmatprep.subr.mxu0 %v2294_v0 }
 0xaf2   :  { %2188 = vmatpush3.msra.mxu0 %v1506_v20  ;;  %2203 = vmatprep.mubr.msk.f32.mxu0 %vm2296_vm0, %v2294_v0 }
 0xaf3   :  { %2189 = vmatprep.subr.mxu0 %v2294_v0 }
 0xaf4   :  { %2190 = vmatpush3.msra.mxu0 %v1505_v21 }
 0xaf5   :  { %2191 = vmatprep.subr.mxu0 %v2294_v0 }
 0xaf6   :  { %2192 = vmatpush3.msra.mxu0 %v1504_v22 }
 0xaf7   :  { %2193 = vmatprep.subr.mxu0 %v2294_v0 }
 0xaf8   :  { %2194 = vmatpush3.msra.mxu0 %v1503_v23 }
 0xaf9   :  { %2195 = vmatprep.subr.mxu0 %v2294_v0 }
 0xafa   :  { %2196 = vmatpush3.msra.mxu0 %v1502_v24 }
 0xafb   :  { %2197 = vmatprep.subr.mxu0 %v2294_v0 }
 0xafc   :  { %2198 = vmatpush3.msra.mxu0 %v1501_v25 }
 0xafd   :  { %2199 = vmatprep.subr.mxu0 %v2294_v0 }
 0xafe   :  { %2200 = vmatpush3.msra.mxu0 %v1500_v26 }
 0xaff   :  { %2201 = vmatprep.subr.mxu0 %v2294_v0 }
 0xb00   :  { %2202 = vmatpush3.msra.mxu0 %v1499_v27 }
 0xb62   :  { %v1496_v28 = vpop.permute.xlu0 %1495 }
 0xbb1   :  { %v1490_v30 = vpop.f32.mrf.mxu0 }
 0xbb2   :  { %v1498_v31 = vsel %vm225_vm3, %v1490_v30, %v1496_v28 }
 0xbb3   :  { %v2186_v32 = vpop.f32.mrf.mxu0  ;;  %2204 = vmatmul.mubr.msk.f32.vlgmr.msra.gmra.mxu0 %vm321_vm5, %v1498_v31 }
 0xc73   :  { %v1583_v38 = vpop.f32.mrf.mxu0 }
 0xc74   :  { %v1584_v40 = vadd.f32 %v1861_v36, %v1583_v38 }
 0xc75   :  { %v2205_v41 = vpop.f32.mrf.mxu0 }
 0xc76   :  { %v1587_v42 = vadd.f32 %v1584_v40, %v484_v39 }
 0xc78   :  { %v1863_v29 = vmul.f32 -1.442695, %v1587_v42 }
 0xc7a   :  { %2284 = vpow2.f32 %v1863_v29 }
 0xc87   :  { %v2285_v34 = vpop.eup %2284 }
 0xc88   :  { %v1591_v43 = vadd.f32 1.0, %v2285_v34 }
 0xc8a   :  { %2286 = vrcp.f32 %v1591_v43 }
 0xc97   :  { %v2706_v58 = vpop.eup %2286 }
 0xc98   :  { %v1594_v44 = vmul.f32 %v2706_v58, %v2352_v3  ;;  %v1675_v3 = vld [vmem:[%s1831_s6 + $0x28] sm:$0xff]  ;;  %v1765_v21 = vmul.f32 %v2706_v58, %v2431_v33 }
 0xc9a   :  { %1596 = vrot.lane.b32.xlu1 %v1594_v44, %s2299_s15  ;;  %s2328_s15 = smov 29  }
 0xc9b   :  { %s1832_s9 = sld [smem:[%s2759_s0 + %s2328_s15]]  }
 0xca1   :  { %v1865_v54 = vld [vmem:[%s1832_s9] ss:$0 sm:$0xff] }
 0xd0c   :  { %v1597_v7 = vpop.permute.xlu1 %1596 }
 0xd0d   :  { %2207 = vmatpush3.msra.mxu1 %v1597_v7 }
 0xd0e   :  { %2209 = vmatmul.mubr.msk.f32.vlgmr.msra.gmra.mxu1 %vm227_vm4, %v2369_v10  ;;  %2211 = vmatprep.subr.mxu1 %v2294_v0  ;;  %v1672_v10 = vld [vmem:[%s1831_s6 + $0x10] sm:$0xff] }
 0xd0f   :  { %2212 = vmatpush3.msra.mxu1 %v1677_v46  ;;  %2227 = vmatprep.mubr.msk.f32.mxu1 %vm2296_vm0, %v2294_v0 }
 0xd10   :  { %2213 = vmatprep.subr.mxu1 %v2294_v0 }
 0xd11   :  { %2214 = vmatpush3.msra.mxu1 %v1676_v47 }
 0xd12   :  { %2215 = vmatprep.subr.mxu1 %v2294_v0 }
 0xd13   :  { %2216 = vmatpush3.msra.mxu1 %v1675_v3 }
 0xd14   :  { %2217 = vmatprep.subr.mxu1 %v2294_v0 }
 0xd15   :  { %2218 = vmatpush3.msra.mxu1 %v1674_v48 }
 0xd16   :  { %2219 = vmatprep.subr.mxu1 %v2294_v0 }
 0xd17   :  { %2220 = vmatpush3.msra.mxu1 %v1673_v49 }
 0xd18   :  { %2221 = vmatprep.subr.mxu1 %v2294_v0 }
 0xd19   :  { %2222 = vmatpush3.msra.mxu1 %v1672_v10 }
 0xd1a   :  { %2223 = vmatprep.subr.mxu1 %v2294_v0 }
 0xd1b   :  { %2224 = vmatpush3.msra.mxu1 %v1671_v50 }
 0xd1c   :  { %2225 = vmatprep.subr.mxu1 %v2294_v0 }
 0xd1d   :  { %2226 = vmatpush3.msra.mxu1 %v1670_v51 }
 0xdce   :  { %v1665_v52 = vpop.f32.mrf.mxu1 }
 0xdcf   :  { %v1669_v53 = vsel %vm225_vm3, %v1665_v52, %v1594_v44 }
 0xdd0   :  { %2228 = vmatmul.mubr.msk.f32.vlgmr.msra.gmra.mxu1 %vm321_vm5, %v1669_v53  ;;  %v2210_v6 = vpop.f32.mrf.mxu1 }
 0xe90   :  { %v1754_v8 = vpop.f32.mrf.mxu1 }
 0xe91   :  { %v1755_v55 = vadd.f32 %v1865_v54, %v1754_v8 }
 0xe92   :  { %v2229_v56 = vpop.f32.mrf.mxu1 }
 0xe93   :  { %1759 = vrot.lane.b32.xlu0 %v1755_v55, %s2302_s24 }
 0xe97   :  { %1774 = vrot.lane.b32.xlu0 %v2552_v45, %s2298_s14  ;;  %v668_v45 = vadd.f32 %v1846_v60, %v2543_v37  ;;  %v1766_v37 = vsub.f32 1.0, %v2706_v58 }
 0xe99   :  { %v674_v61 = vand.u32 2147483647, %v668_v45  ;;  %v671_v15 = vmax.f32 %v668_v45, 0.0  ;;  %vm672_vm11 = vcmp.ne.f32.partialorder %v668_v45, %v668_v45 }
 0xe9b   :  { %1780 = vrot.lane.b32.xlu0 %v2571_v9, %s2302_s24  ;;  %v675_v62 = vsub.f32 0.0, %v674_v61 }
 0xe9d   :  { %v676_v9 = vmul.f32 1.442695, %v675_v62 }
 0xf05   :  { %v1760_v0 = vpop.permute.xlu0 %1759 }
 0xf06   :  { %v1762_v57 = vadd.f32 %v1760_v0, %v1584_v40 }
 0xf08   :  { %2288 = vtanh.f32 %v1762_v57 }
 0xf09   :  { %2290 = vpow2.f32 %v676_v9  ;;  %v1775_v17 = vpop.permute.xlu0 %1774 }
 0xf0d   :  { %v1781_v27 = vpop.permute.xlu0 %1780 }
 0xf15   :  { %v2289_v59 = vpop.eup %2288 }
 0xf16   :  { %1768 = vrot.lane.b32.xlu1 %v2289_v59, %s2302_s24  ;;  %v2291_v63 = vpop.eup %2290  ;;  %s2330_s24 = smov 30  }
 0xf17   :  { %v678_v2 = vadd.f32 1.0, %v2291_v63  ;;  %v681_v4 = vmul.f32 -0.5, %v2291_v63  ;;  %v684_v12 = vand.u32 2147483647, %v2291_v63  ;;  %s1833_s18 = sld [smem:[%s2759_s0 + %s2330_s24]]  }
 0xf19   :  { %2292 = vlog2.f32 %v678_v2  ;;  %v682_v11 = vadd.f32 1.0, %v681_v4  ;;  %vm685_vm10 = vcmp.lt.f32.partialorder %v684_v12, 0.0004427343 }
 0xf1a   :  { %1777 = vrot.lane.b32.xlu1 %v2564_v1, %s2298_s14 }
 0xf1b   :  { %v683_v13 = vmul.f32 %v2291_v63, %v682_v11 }
 0xf26   :  { %v2293_v5 = vpop.eup %2292 }
 0xf27   :  { %v680_v1 = vmul.f32 0.6931472, %v2293_v5 }
 0xf29   :  { %v686_v14 = vsel %vm685_vm10, %v683_v13, %v680_v1 }
 0xf2a   :  { %v687_v16 = vadd.f32 %v686_v14, %v671_v15 }
 0xf2c   :  { %v688_v18 = vsel %vm672_vm11, %v668_v45, %v687_v16 }
 0xf2d   :  { %v1783_v23 = vsel %vm990_vm9, %v668_v45, %v688_v18 }
 0xf2e   :  { %v1784_v25 = vsel %vm225_vm3, %v1783_v23, %v1775_v17 }
 0xf88   :  { %v1769_v20 = vpop.permute.xlu1 %1768 }
 0xf89   :  { %v1771_v22 = vmul.f32 %v1769_v20, %v1766_v37 }
 0xf8b   :  { %v1772_v24 = vadd.f32 %v1771_v22, %v1765_v21 }
 0xf8c   :  { %v1778_v26 = vpop.permute.xlu1 %1777 }
 0xf8d   :  { %v1786_v28 = vsel %vm1785_vm12, %v1784_v25, %v1778_v26  ;;  %1791 = vrot.lane.b32.xlu1 %v1772_v24, %s2298_s14 }
 0xf8e   :  { %v1787_v30 = vsel %vm321_vm5, %v1786_v28, %v1781_v27 }
 0xf8f   :  { %1789 = vst.msk [vmem:[%s1833_s18] sm:$0xff] %vm1788_vm13, %v1787_v30 }
 0xfff   :  { %v1792_v33 = vpop.permute.xlu1 %1791 }
0x1000   :  { %v1794_v31 = vsel %vm225_vm3, %v2672_v19, %v1792_v33 }
0x1001   :  { %1795 = vst.msk [vmem:[%s1834_s22] sm:$0xff] %vm321_vm5, %v1794_v31 }

</bundles_post_ra>
